<compile_context>
chip_gen: v6e
topology: v6e:2x2x1
jax: 0.10.0
libtpu: 0.0.40
codegen_flags: <defaults>
</compile_context>

<pallas_src>
import functools
import math

import jax
import jax.numpy as jnp
from jax import lax
from jax.experimental import pallas as pl
from jax.experimental.pallas import tpu as pltpu


def _make_kernel(*, T, B_pad, H, n_deep):
    """Kernel closure over static sizes. Ref order:
       x2d, w_ih0, b0, w_hh0, [w_ih_l, w_hh_l, b_l]*n_deep, w_fc, b_fc, out."""

    def kernel(*refs):
        idx = 0
        x_ref = refs[idx]; idx += 1
        w_ih0_ref = refs[idx]; idx += 1
        b0_ref = refs[idx]; idx += 1
        w_hh0_ref = refs[idx]; idx += 1
        deep_refs = []
        for _ in range(n_deep):
            deep_refs.append((refs[idx], refs[idx + 1], refs[idx + 2]))
            idx += 3
        w_fc_ref = refs[idx]; idx += 1
        b_fc_ref = refs[idx]; idx += 1
        out_ref = refs[idx]

        f32 = jnp.float32
        bf16 = jnp.bfloat16

        # ---- hoisted loop-invariant loads / broadcasts ---------------------
        w_hh0 = w_hh0_ref[...]                                  # (H, 4H) bf16
        deep_w = []
        for (w_ih_ref, w_hh_ref, b_ref) in deep_refs:
            deep_w.append((w_ih_ref[...],                       # (H, 4H) bf16
                           w_hh_ref[...],                       # (H, 4H) bf16
                           jnp.broadcast_to(b_ref[...], (B_pad, 4 * H))))

        # ---- batched layer-0 input projection for ALL time steps -----------
        # (T*B_pad, D_in)bf16 @ (D_in, 4H)bf16 -> f32, bias folded in.
        xp_all = (jnp.dot(x_ref[...], w_ih0_ref[...],
                          preferred_element_type=f32)
                  + b0_ref[...])                                # (T*B_pad, 4H)

        def cell(gates, c_prev):
            # sigmoid via EUP (exp + approx reciprocal); elementwise math f32.
            sig = pl.reciprocal(1.0 + jnp.exp(-gates), approx=True)
            tnh = jnp.tanh(gates)
            i_g = sig[:, 0 * H:1 * H]
            f_g = sig[:, 1 * H:2 * H]
            g_g = tnh[:, 2 * H:3 * H]
            o_g = sig[:, 3 * H:4 * H]
            c_new = f_g * c_prev + i_g * g_g
            h_new = o_g * jnp.tanh(c_new)
            return h_new, c_new

        zeros = jnp.zeros((B_pad, H), f32)
        hs = [zeros] * (n_deep + 1)
        cs = [zeros] * (n_deep + 1)

        # Fully unrolled time recurrence with static slices (T is tiny).
        # TODO(synk): for large T, switch to lax.fori_loop with unroll=2-4 and
        # dynamic_slice on xp_all to keep the vreg file from spilling.
        for t in range(T):
            # layer 0: precomputed input projection + recurrent matmul.
            gates0 = (xp_all[t * B_pad:(t + 1) * B_pad, :]
                      + jnp.dot(hs[0].astype(bf16), w_hh0,
                                preferred_element_type=f32))
            h_l, c_l = cell(gates0, cs[0])
            hs[0], cs[0] = h_l, c_l
            inp = h_l

            for l in range(1, n_deep + 1):
                w_ih_l, w_hh_l, b_l = deep_w[l - 1]
                gates = (jnp.dot(inp.astype(bf16), w_ih_l,
                                 preferred_element_type=f32)
                         + jnp.dot(hs[l].astype(bf16), w_hh_l,
                                   preferred_element_type=f32)
                         + b_l)
                h_l, c_l = cell(gates, cs[l])
                hs[l], cs[l] = h_l, c_l
                inp = h_l

        # final Linear on h_T of the last layer (lane-dense padded output).
        out_ref[...] = (jnp.dot(hs[-1].astype(bf16), w_fc_ref[...],
                                preferred_element_type=f32)
                        + b_fc_ref[...])

    return kernel


def prepare_params(params, *, hidden_dim, layer_dim, output_dim):
    """One-time preprocessing: bf16 casts for matmul operands, fc lane padding."""
    del hidden_dim
    OUT_PAD = max(128, ((output_dim + 127) // 128) * 128)
    bf16 = jnp.bfloat16
    return {
        "w_ih0": params["w_ih"][0].astype(bf16),                # (D_in, 4H)
        "b0": params["b"][0],                                   # (1, 4H) f32
        "w_hh0": params["w_hh"][0].astype(bf16),                # (H, 4H)
        "deep": [(params["w_ih"][l].astype(bf16),
                  params["w_hh"][l].astype(bf16),
                  params["b"][l]) for l in range(1, layer_dim)],
        "w_fc": jnp.pad(params["w_fc"],
                        ((0, 0), (0, OUT_PAD - output_dim))).astype(bf16),
        "b_fc": jnp.pad(params["b_fc"],
                        ((0, 0), (0, OUT_PAD - output_dim))),   # (1, OUT_PAD)
    }


@functools.partial(jax.jit,
                   static_argnames=("hidden_dim", "layer_dim", "output_dim"))
def lstm_pallas(x, prepped, *, hidden_dim, layer_dim, output_dim):
    """x: (B, T, D_in) float32.  Returns fc(h_T of last layer): (B, output_dim)."""
    B, T, D_in = x.shape
    H = hidden_dim
    B_pad = max(8, ((B + 7) // 8) * 8)            # sublane tile
    OUT_PAD = prepped["w_fc"].shape[1]            # lane-dense output width
    n_deep = layer_dim - 1

    # time-major, batch padded to B_pad, flattened for one big matmul; bf16.
    x_tm = jnp.transpose(x, (1, 0, 2))                         # (T, B, D_in)
    x_tm = jnp.pad(x_tm, ((0, 0), (0, B_pad - B), (0, 0)))     # (T, B_pad, D_in)
    x2d = x_tm.reshape(T * B_pad, D_in).astype(jnp.bfloat16)

    operands = [x2d, prepped["w_ih0"], prepped["b0"], prepped["w_hh0"]]
    for (w_ih_l, w_hh_l, b_l) in prepped["deep"]:
        operands += [w_ih_l, w_hh_l, b_l]
    operands += [prepped["w_fc"], prepped["b_fc"]]

    kernel = _make_kernel(T=T, B_pad=B_pad, H=H, n_deep=n_deep)

    vmem = pl.BlockSpec(memory_space=pltpu.MemorySpace.VMEM)
    out_pad = pl.pallas_call(
        kernel,
        out_shape=jax.ShapeDtypeStruct((B_pad, OUT_PAD), jnp.float32),
        in_specs=[vmem] * len(operands),
        out_specs=vmem,
    )(*operands)

    # TODO(synk): at real batch sizes add a leading "parallel" batch grid axis
    # (2 TensorCores on v7x) and re-derive VMEM residency against 64 MiB.
    return out_pad[:B, :output_dim]


def lstm_reference(x, params, *, hidden_dim, layer_dim, output_dim):
    """Pure-JAX f32 reference (matches torch.nn.LSTM batch_first forward)."""
    del output_dim
    B, T, _ = x.shape
    H = hidden_dim
    h0 = jnp.zeros((layer_dim, B, H), jnp.float32)
    c0 = jnp.zeros((layer_dim, B, H), jnp.float32)

    def step(carry, x_t):
        h, c = carry
        inp = x_t
        new_h, new_c = [], []
        for l in range(layer_dim):
            gates = (inp @ params["w_ih"][l] + h[l] @ params["w_hh"][l]
                     + params["b"][l][0])
            i_g = jax.nn.sigmoid(gates[:, 0 * H:1 * H])
            f_g = jax.nn.sigmoid(gates[:, 1 * H:2 * H])
            g_g = jnp.tanh(gates[:, 2 * H:3 * H])
            o_g = jax.nn.sigmoid(gates[:, 3 * H:4 * H])
            c_n = f_g * c[l] + i_g * g_g
            h_n = o_g * jnp.tanh(c_n)
            new_h.append(h_n)
            new_c.append(c_n)
            inp = h_n
        return (jnp.stack(new_h), jnp.stack(new_c)), inp

    (h_fin, _), _ = lax.scan(step, (h0, c0), jnp.transpose(x, (1, 0, 2)))
    return h_fin[-1] @ params["w_fc"] + params["b_fc"][0]


def init_params(key, input_dim, hidden_dim, layer_dim, output_dim):
    """Deterministic init mimicking PyTorch's uniform(-1/sqrt(H), 1/sqrt(H))."""
    H = hidden_dim
    k_lstm = 1.0 / math.sqrt(H)
    keys = jax.random.split(key, 4 * layer_dim + 2)
    w_ih, w_hh, b = [], [], []
    for l in range(layer_dim):
        d_l = input_dim if l == 0 else H
        kw1, kw2, kb1, kb2 = keys[4 * l:4 * l + 4]
        # stored pre-transposed: (in_features, 4H), gate order (i, f, g, o).
        w_ih.append(jax.random.uniform(kw1, (d_l, 4 * H), jnp.float32,
                                       -k_lstm, k_lstm))
        w_hh.append(jax.random.uniform(kw2, (H, 4 * H), jnp.float32,
                                       -k_lstm, k_lstm))
        b_ih = jax.random.uniform(kb1, (1, 4 * H), jnp.float32, -k_lstm, k_lstm)
        b_hh = jax.random.uniform(kb2, (1, 4 * H), jnp.float32, -k_lstm, k_lstm)
        b.append(b_ih + b_hh)
    k_fc = 1.0 / math.sqrt(H)
    w_fc = jax.random.uniform(keys[-2], (H, output_dim), jnp.float32,
                              -k_fc, k_fc)
    b_fc = jax.random.uniform(keys[-1], (1, output_dim), jnp.float32,
                              -k_fc, k_fc)
    return {"w_ih": w_ih, "w_hh": w_hh, "b": b, "w_fc": w_fc, "b_fc": b_fc}


if __name__ == "__main__":
    # LSTMModel(input_dim=16, hidden_dim=32, layer_dim=2, output_dim=8)
    input_dim, hidden_dim, layer_dim, output_dim = 16, 32, 2, 8
    batch, seq = 2, 8

    key = jax.random.PRNGKey(0)
    kx, kp = jax.random.split(key)
    x = jax.random.normal(kx, (batch, seq, input_dim), jnp.float32)
    params = init_params(kp, input_dim, hidden_dim, layer_dim, output_dim)

    prepped = prepare_params(params, hidden_dim=hidden_dim,
                             layer_dim=layer_dim, output_dim=output_dim)

    out = lstm_pallas(x, prepped, hidden_dim=hidden_dim,
                      layer_dim=layer_dim, output_dim=output_dim)
    out = jax.block_until_ready(out)

    ref = lstm_reference(x, params, hidden_dim=hidden_dim,
                         layer_dim=layer_dim, output_dim=output_dim)
    assert out.shape == (batch, output_dim)
    # bf16 MXU operands + approx-reciprocal sigmoid -> relaxed tolerance vs.
    # the f32 reference (errors are O(1e-2) worst case at this scale).
    assert jnp.allclose(out, ref, atol=5e-2, rtol=5e-2), (out, ref)
    print("KERNEL_OK")
</pallas_src>

<mosaic_0001>
module attributes {stable_mosaic.version = 11 : i64} {
  func.func @kernel(%arg0: memref<64x16xbf16, #tpu.memory_space<vmem>>, %arg1: memref<16x128xbf16, #tpu.memory_space<vmem>>, %arg2: memref<1x128xf32, #tpu.memory_space<vmem>>, %arg3: memref<32x128xbf16, #tpu.memory_space<vmem>>, %arg4: memref<32x128xbf16, #tpu.memory_space<vmem>>, %arg5: memref<32x128xbf16, #tpu.memory_space<vmem>>, %arg6: memref<1x128xf32, #tpu.memory_space<vmem>>, %arg7: memref<32x128xbf16, #tpu.memory_space<vmem>>, %arg8: memref<1x128xf32, #tpu.memory_space<vmem>>, %arg9: memref<8x128xf32, #tpu.memory_space<vmem>>) attributes {dimension_semantics = [], scalar_prefetch = 0 : i64, scratch_operands = 0 : i64, tpu.core_type = #tpu.core_type<tc>} {
    %c0 = arith.constant 0 : index
    %c0_0 = arith.constant 0 : index
    %0 = vector.load %arg3[%c0, %c0_0] : memref<32x128xbf16, #tpu.memory_space<vmem>>, vector<32x128xbf16>
    %c0_1 = arith.constant 0 : index
    %c0_2 = arith.constant 0 : index
    %1 = vector.load %arg4[%c0_1, %c0_2] : memref<32x128xbf16, #tpu.memory_space<vmem>>, vector<32x128xbf16>
    %c0_3 = arith.constant 0 : index
    %c0_4 = arith.constant 0 : index
    %2 = vector.load %arg5[%c0_3, %c0_4] : memref<32x128xbf16, #tpu.memory_space<vmem>>, vector<32x128xbf16>
    %c0_5 = arith.constant 0 : index
    %c0_6 = arith.constant 0 : index
    %3 = vector.load %arg6[%c0_5, %c0_6] : memref<1x128xf32, #tpu.memory_space<vmem>>, vector<1x128xf32>
    %4 = vector.shape_cast %3 : vector<1x128xf32> to vector<1x128xf32>
    %5 = vector.broadcast %4 : vector<1x128xf32> to vector<8x128xf32>
    %c0_7 = arith.constant 0 : index
    %c0_8 = arith.constant 0 : index
    %6 = vector.load %arg0[%c0_7, %c0_8] : memref<64x16xbf16, #tpu.memory_space<vmem>>, vector<64x16xbf16>
    %c0_9 = arith.constant 0 : index
    %c0_10 = arith.constant 0 : index
    %7 = vector.load %arg1[%c0_9, %c0_10] : memref<16x128xbf16, #tpu.memory_space<vmem>>, vector<16x128xbf16>
    %cst = arith.constant dense<0.000000e+00> : vector<64x128xf32>
    %8 = tpu.matmul %6, %7, %cst {dimension_numbers = #tpu.dot_dimension_numbers<[1], [0], [0], [1], [0, 0, 1, 1], [], []>} : vector<64x16xbf16>, vector<16x128xbf16>, vector<64x128xf32> -> vector<64x128xf32>
    %c0_11 = arith.constant 0 : index
    %c0_12 = arith.constant 0 : index
    %9 = vector.load %arg2[%c0_11, %c0_12] : memref<1x128xf32, #tpu.memory_space<vmem>>, vector<1x128xf32>
    %10 = vector.broadcast %9 : vector<1x128xf32> to vector<64x128xf32>
    %11 = arith.addf %8, %10 : vector<64x128xf32>
    %cst_13 = arith.constant 0.000000e+00 : f32
    %12 = vector.broadcast %cst_13 : f32 to vector<8x32xf32>
    %13 = vector.extract_strided_slice %11 {offsets = [0, 0], sizes = [8, 128], strides = [1, 1]} : vector<64x128xf32> to vector<8x128xf32>
    %14 = arith.truncf %12 : vector<8x32xf32> to vector<8x32xbf16>
    %cst_14 = arith.constant dense<0.000000e+00> : vector<8x128xf32>
    %15 = tpu.matmul %14, %0, %cst_14 {dimension_numbers = #tpu.dot_dimension_numbers<[1], [0], [0], [1], [0, 0, 1, 1], [], []>} : vector<8x32xbf16>, vector<32x128xbf16>, vector<8x128xf32> -> vector<8x128xf32>
    %16 = arith.addf %13, %15 : vector<8x128xf32>
    %cst_15 = arith.constant 0.000000e+00 : f32
    %17 = vector.broadcast %cst_15 : f32 to vector<8x128xf32>
    %18 = arith.subf %17, %16 : vector<8x128xf32>
    %19 = math.exp %18 : vector<8x128xf32>
    %cst_16 = arith.constant 1.000000e+00 : f32
    %20 = vector.broadcast %cst_16 : f32 to vector<8x128xf32>
    %21 = arith.addf %20, %19 : vector<8x128xf32>
    %22 = tpu.reciprocal %21 {approx = true} : vector<8x128xf32> -> vector<8x128xf32>
    %23 = math.tanh %16 : vector<8x128xf32>
    %24 = vector.extract_strided_slice %22 {offsets = [0, 0], sizes = [8, 32], strides = [1, 1]} : vector<8x128xf32> to vector<8x32xf32>
    %25 = vector.extract_strided_slice %22 {offsets = [0, 32], sizes = [8, 32], strides = [1, 1]} : vector<8x128xf32> to vector<8x32xf32>
    %26 = vector.extract_strided_slice %23 {offsets = [0, 64], sizes = [8, 32], strides = [1, 1]} : vector<8x128xf32> to vector<8x32xf32>
    %27 = vector.extract_strided_slice %22 {offsets = [0, 96], sizes = [8, 32], strides = [1, 1]} : vector<8x128xf32> to vector<8x32xf32>
    %28 = arith.mulf %25, %12 : vector<8x32xf32>
    %29 = arith.mulf %24, %26 : vector<8x32xf32>
    %30 = arith.addf %28, %29 : vector<8x32xf32>
    %31 = math.tanh %30 : vector<8x32xf32>
    %32 = arith.mulf %27, %31 : vector<8x32xf32>
    %33 = arith.truncf %32 : vector<8x32xf32> to vector<8x32xbf16>
    %cst_17 = arith.constant dense<0.000000e+00> : vector<8x128xf32>
    %34 = tpu.matmul %33, %1, %cst_17 {dimension_numbers = #tpu.dot_dimension_numbers<[1], [0], [0], [1], [0, 0, 1, 1], [], []>} : vector<8x32xbf16>, vector<32x128xbf16>, vector<8x128xf32> -> vector<8x128xf32>
    %35 = arith.truncf %12 : vector<8x32xf32> to vector<8x32xbf16>
    %cst_18 = arith.constant dense<0.000000e+00> : vector<8x128xf32>
    %36 = tpu.matmul %35, %2, %cst_18 {dimension_numbers = #tpu.dot_dimension_numbers<[1], [0], [0], [1], [0, 0, 1, 1], [], []>} : vector<8x32xbf16>, vector<32x128xbf16>, vector<8x128xf32> -> vector<8x128xf32>
    %37 = arith.addf %34, %36 : vector<8x128xf32>
    %38 = arith.addf %37, %5 : vector<8x128xf32>
    %cst_19 = arith.constant 0.000000e+00 : f32
    %39 = vector.broadcast %cst_19 : f32 to vector<8x128xf32>
    %40 = arith.subf %39, %38 : vector<8x128xf32>
    %41 = math.exp %40 : vector<8x128xf32>
    %cst_20 = arith.constant 1.000000e+00 : f32
    %42 = vector.broadcast %cst_20 : f32 to vector<8x128xf32>
    %43 = arith.addf %42, %41 : vector<8x128xf32>
    %44 = tpu.reciprocal %43 {approx = true} : vector<8x128xf32> -> vector<8x128xf32>
    %45 = math.tanh %38 : vector<8x128xf32>
    %46 = vector.extract_strided_slice %44 {offsets = [0, 0], sizes = [8, 32], strides = [1, 1]} : vector<8x128xf32> to vector<8x32xf32>
    %47 = vector.extract_strided_slice %44 {offsets = [0, 32], sizes = [8, 32], strides = [1, 1]} : vector<8x128xf32> to vector<8x32xf32>
    %48 = vector.extract_strided_slice %45 {offsets = [0, 64], sizes = [8, 32], strides = [1, 1]} : vector<8x128xf32> to vector<8x32xf32>
    %49 = vector.extract_strided_slice %44 {offsets = [0, 96], sizes = [8, 32], strides = [1, 1]} : vector<8x128xf32> to vector<8x32xf32>
    %50 = arith.mulf %47, %12 : vector<8x32xf32>
    %51 = arith.mulf %46, %48 : vector<8x32xf32>
    %52 = arith.addf %50, %51 : vector<8x32xf32>
    %53 = math.tanh %52 : vector<8x32xf32>
    %54 = arith.mulf %49, %53 : vector<8x32xf32>
    %55 = vector.extract_strided_slice %11 {offsets = [8, 0], sizes = [8, 128], strides = [1, 1]} : vector<64x128xf32> to vector<8x128xf32>
    %56 = arith.truncf %32 : vector<8x32xf32> to vector<8x32xbf16>
    %cst_21 = arith.constant dense<0.000000e+00> : vector<8x128xf32>
    %57 = tpu.matmul %56, %0, %cst_21 {dimension_numbers = #tpu.dot_dimension_numbers<[1], [0], [0], [1], [0, 0, 1, 1], [], []>} : vector<8x32xbf16>, vector<32x128xbf16>, vector<8x128xf32> -> vector<8x128xf32>
    %58 = arith.addf %55, %57 : vector<8x128xf32>
    %cst_22 = arith.constant 0.000000e+00 : f32
    %59 = vector.broadcast %cst_22 : f32 to vector<8x128xf32>
    %60 = arith.subf %59, %58 : vector<8x128xf32>
    %61 = math.exp %60 : vector<8x128xf32>
    %cst_23 = arith.constant 1.000000e+00 : f32
    %62 = vector.broadcast %cst_23 : f32 to vector<8x128xf32>
    %63 = arith.addf %62, %61 : vector<8x128xf32>
    %64 = tpu.reciprocal %63 {approx = true} : vector<8x128xf32> -> vector<8x128xf32>
    %65 = math.tanh %58 : vector<8x128xf32>
    %66 = vector.extract_strided_slice %64 {offsets = [0, 0], sizes = [8, 32], strides = [1, 1]} : vector<8x128xf32> to vector<8x32xf32>
    %67 = vector.extract_strided_slice %64 {offsets = [0, 32], sizes = [8, 32], strides = [1, 1]} : vector<8x128xf32> to vector<8x32xf32>
    %68 = vector.extract_strided_slice %65 {offsets = [0, 64], sizes = [8, 32], strides = [1, 1]} : vector<8x128xf32> to vector<8x32xf32>
    %69 = vector.extract_strided_slice %64 {offsets = [0, 96], sizes = [8, 32], strides = [1, 1]} : vector<8x128xf32> to vector<8x32xf32>
    %70 = arith.mulf %67, %30 : vector<8x32xf32>
    %71 = arith.mulf %66, %68 : vector<8x32xf32>
    %72 = arith.addf %70, %71 : vector<8x32xf32>
    %73 = math.tanh %72 : vector<8x32xf32>
    %74 = arith.mulf %69, %73 : vector<8x32xf32>
    %75 = arith.truncf %74 : vector<8x32xf32> to vector<8x32xbf16>
    %cst_24 = arith.constant dense<0.000000e+00> : vector<8x128xf32>
    %76 = tpu.matmul %75, %1, %cst_24 {dimension_numbers = #tpu.dot_dimension_numbers<[1], [0], [0], [1], [0, 0, 1, 1], [], []>} : vector<8x32xbf16>, vector<32x128xbf16>, vector<8x128xf32> -> vector<8x128xf32>
    %77 = arith.truncf %54 : vector<8x32xf32> to vector<8x32xbf16>
    %cst_25 = arith.constant dense<0.000000e+00> : vector<8x128xf32>
    %78 = tpu.matmul %77, %2, %cst_25 {dimension_numbers = #tpu.dot_dimension_numbers<[1], [0], [0], [1], [0, 0, 1, 1], [], []>} : vector<8x32xbf16>, vector<32x128xbf16>, vector<8x128xf32> -> vector<8x128xf32>
    %79 = arith.addf %76, %78 : vector<8x128xf32>
    %80 = arith.addf %79, %5 : vector<8x128xf32>
    %cst_26 = arith.constant 0.000000e+00 : f32
    %81 = vector.broadcast %cst_26 : f32 to vector<8x128xf32>
    %82 = arith.subf %81, %80 : vector<8x128xf32>
    %83 = math.exp %82 : vector<8x128xf32>
    %cst_27 = arith.constant 1.000000e+00 : f32
    %84 = vector.broadcast %cst_27 : f32 to vector<8x128xf32>
    %85 = arith.addf %84, %83 : vector<8x128xf32>
    %86 = tpu.reciprocal %85 {approx = true} : vector<8x128xf32> -> vector<8x128xf32>
    %87 = math.tanh %80 : vector<8x128xf32>
    %88 = vector.extract_strided_slice %86 {offsets = [0, 0], sizes = [8, 32], strides = [1, 1]} : vector<8x128xf32> to vector<8x32xf32>
    %89 = vector.extract_strided_slice %86 {offsets = [0, 32], sizes = [8, 32], strides = [1, 1]} : vector<8x128xf32> to vector<8x32xf32>
    %90 = vector.extract_strided_slice %87 {offsets = [0, 64], sizes = [8, 32], strides = [1, 1]} : vector<8x128xf32> to vector<8x32xf32>
    %91 = vector.extract_strided_slice %86 {offsets = [0, 96], sizes = [8, 32], strides = [1, 1]} : vector<8x128xf32> to vector<8x32xf32>
    %92 = arith.mulf %89, %52 : vector<8x32xf32>
    %93 = arith.mulf %88, %90 : vector<8x32xf32>
    %94 = arith.addf %92, %93 : vector<8x32xf32>
    %95 = math.tanh %94 : vector<8x32xf32>
    %96 = arith.mulf %91, %95 : vector<8x32xf32>
    %97 = vector.extract_strided_slice %11 {offsets = [16, 0], sizes = [8, 128], strides = [1, 1]} : vector<64x128xf32> to vector<8x128xf32>
    %98 = arith.truncf %74 : vector<8x32xf32> to vector<8x32xbf16>
    %cst_28 = arith.constant dense<0.000000e+00> : vector<8x128xf32>
    %99 = tpu.matmul %98, %0, %cst_28 {dimension_numbers = #tpu.dot_dimension_numbers<[1], [0], [0], [1], [0, 0, 1, 1], [], []>} : vector<8x32xbf16>, vector<32x128xbf16>, vector<8x128xf32> -> vector<8x128xf32>
    %100 = arith.addf %97, %99 : vector<8x128xf32>
    %cst_29 = arith.constant 0.000000e+00 : f32
    %101 = vector.broadcast %cst_29 : f32 to vector<8x128xf32>
    %102 = arith.subf %101, %100 : vector<8x128xf32>
    %103 = math.exp %102 : vector<8x128xf32>
    %cst_30 = arith.constant 1.000000e+00 : f32
    %104 = vector.broadcast %cst_30 : f32 to vector<8x128xf32>
    %105 = arith.addf %104, %103 : vector<8x128xf32>
    %106 = tpu.reciprocal %105 {approx = true} : vector<8x128xf32> -> vector<8x128xf32>
    %107 = math.tanh %100 : vector<8x128xf32>
    %108 = vector.extract_strided_slice %106 {offsets = [0, 0], sizes = [8, 32], strides = [1, 1]} : vector<8x128xf32> to vector<8x32xf32>
    %109 = vector.extract_strided_slice %106 {offsets = [0, 32], sizes = [8, 32], strides = [1, 1]} : vector<8x128xf32> to vector<8x32xf32>
    %110 = vector.extract_strided_slice %107 {offsets = [0, 64], sizes = [8, 32], strides = [1, 1]} : vector<8x128xf32> to vector<8x32xf32>
    %111 = vector.extract_strided_slice %106 {offsets = [0, 96], sizes = [8, 32], strides = [1, 1]} : vector<8x128xf32> to vector<8x32xf32>
    %112 = arith.mulf %109, %72 : vector<8x32xf32>
    %113 = arith.mulf %108, %110 : vector<8x32xf32>
    %114 = arith.addf %112, %113 : vector<8x32xf32>
    %115 = math.tanh %114 : vector<8x32xf32>
    %116 = arith.mulf %111, %115 : vector<8x32xf32>
    %117 = arith.truncf %116 : vector<8x32xf32> to vector<8x32xbf16>
    %cst_31 = arith.constant dense<0.000000e+00> : vector<8x128xf32>
    %118 = tpu.matmul %117, %1, %cst_31 {dimension_numbers = #tpu.dot_dimension_numbers<[1], [0], [0], [1], [0, 0, 1, 1], [], []>} : vector<8x32xbf16>, vector<32x128xbf16>, vector<8x128xf32> -> vector<8x128xf32>
    %119 = arith.truncf %96 : vector<8x32xf32> to vector<8x32xbf16>
    %cst_32 = arith.constant dense<0.000000e+00> : vector<8x128xf32>
    %120 = tpu.matmul %119, %2, %cst_32 {dimension_numbers = #tpu.dot_dimension_numbers<[1], [0], [0], [1], [0, 0, 1, 1], [], []>} : vector<8x32xbf16>, vector<32x128xbf16>, vector<8x128xf32> -> vector<8x128xf32>
    %121 = arith.addf %118, %120 : vector<8x128xf32>
    %122 = arith.addf %121, %5 : vector<8x128xf32>
    %cst_33 = arith.constant 0.000000e+00 : f32
    %123 = vector.broadcast %cst_33 : f32 to vector<8x128xf32>
    %124 = arith.subf %123, %122 : vector<8x128xf32>
    %125 = math.exp %124 : vector<8x128xf32>
    %cst_34 = arith.constant 1.000000e+00 : f32
    %126 = vector.broadcast %cst_34 : f32 to vector<8x128xf32>
    %127 = arith.addf %126, %125 : vector<8x128xf32>
    %128 = tpu.reciprocal %127 {approx = true} : vector<8x128xf32> -> vector<8x128xf32>
    %129 = math.tanh %122 : vector<8x128xf32>
    %130 = vector.extract_strided_slice %128 {offsets = [0, 0], sizes = [8, 32], strides = [1, 1]} : vector<8x128xf32> to vector<8x32xf32>
    %131 = vector.extract_strided_slice %128 {offsets = [0, 32], sizes = [8, 32], strides = [1, 1]} : vector<8x128xf32> to vector<8x32xf32>
    %132 = vector.extract_strided_slice %129 {offsets = [0, 64], sizes = [8, 32], strides = [1, 1]} : vector<8x128xf32> to vector<8x32xf32>
    %133 = vector.extract_strided_slice %128 {offsets = [0, 96], sizes = [8, 32], strides = [1, 1]} : vector<8x128xf32> to vector<8x32xf32>
    %134 = arith.mulf %131, %94 : vector<8x32xf32>
    %135 = arith.mulf %130, %132 : vector<8x32xf32>
    %136 = arith.addf %134, %135 : vector<8x32xf32>
    %137 = math.tanh %136 : vector<8x32xf32>
    %138 = arith.mulf %133, %137 : vector<8x32xf32>
    %139 = vector.extract_strided_slice %11 {offsets = [24, 0], sizes = [8, 128], strides = [1, 1]} : vector<64x128xf32> to vector<8x128xf32>
    %140 = arith.truncf %116 : vector<8x32xf32> to vector<8x32xbf16>
    %cst_35 = arith.constant dense<0.000000e+00> : vector<8x128xf32>
    %141 = tpu.matmul %140, %0, %cst_35 {dimension_numbers = #tpu.dot_dimension_numbers<[1], [0], [0], [1], [0, 0, 1, 1], [], []>} : vector<8x32xbf16>, vector<32x128xbf16>, vector<8x128xf32> -> vector<8x128xf32>
    %142 = arith.addf %139, %141 : vector<8x128xf32>
    %cst_36 = arith.constant 0.000000e+00 : f32
    %143 = vector.broadcast %cst_36 : f32 to vector<8x128xf32>
    %144 = arith.subf %143, %142 : vector<8x128xf32>
    %145 = math.exp %144 : vector<8x128xf32>
    %cst_37 = arith.constant 1.000000e+00 : f32
    %146 = vector.broadcast %cst_37 : f32 to vector<8x128xf32>
    %147 = arith.addf %146, %145 : vector<8x128xf32>
    %148 = tpu.reciprocal %147 {approx = true} : vector<8x128xf32> -> vector<8x128xf32>
    %149 = math.tanh %142 : vector<8x128xf32>
    %150 = vector.extract_strided_slice %148 {offsets = [0, 0], sizes = [8, 32], strides = [1, 1]} : vector<8x128xf32> to vector<8x32xf32>
    %151 = vector.extract_strided_slice %148 {offsets = [0, 32], sizes = [8, 32], strides = [1, 1]} : vector<8x128xf32> to vector<8x32xf32>
    %152 = vector.extract_strided_slice %149 {offsets = [0, 64], sizes = [8, 32], strides = [1, 1]} : vector<8x128xf32> to vector<8x32xf32>
    %153 = vector.extract_strided_slice %148 {offsets = [0, 96], sizes = [8, 32], strides = [1, 1]} : vector<8x128xf32> to vector<8x32xf32>
    %154 = arith.mulf %151, %114 : vector<8x32xf32>
    %155 = arith.mulf %150, %152 : vector<8x32xf32>
    %156 = arith.addf %154, %155 : vector<8x32xf32>
    %157 = math.tanh %156 : vector<8x32xf32>
    %158 = arith.mulf %153, %157 : vector<8x32xf32>
    %159 = arith.truncf %158 : vector<8x32xf32> to vector<8x32xbf16>
    %cst_38 = arith.constant dense<0.000000e+00> : vector<8x128xf32>
    %160 = tpu.matmul %159, %1, %cst_38 {dimension_numbers = #tpu.dot_dimension_numbers<[1], [0], [0], [1], [0, 0, 1, 1], [], []>} : vector<8x32xbf16>, vector<32x128xbf16>, vector<8x128xf32> -> vector<8x128xf32>
    %161 = arith.truncf %138 : vector<8x32xf32> to vector<8x32xbf16>
    %cst_39 = arith.constant dense<0.000000e+00> : vector<8x128xf32>
    %162 = tpu.matmul %161, %2, %cst_39 {dimension_numbers = #tpu.dot_dimension_numbers<[1], [0], [0], [1], [0, 0, 1, 1], [], []>} : vector<8x32xbf16>, vector<32x128xbf16>, vector<8x128xf32> -> vector<8x128xf32>
    %163 = arith.addf %160, %162 : vector<8x128xf32>
    %164 = arith.addf %163, %5 : vector<8x128xf32>
    %cst_40 = arith.constant 0.000000e+00 : f32
    %165 = vector.broadcast %cst_40 : f32 to vector<8x128xf32>
    %166 = arith.subf %165, %164 : vector<8x128xf32>
    %167 = math.exp %166 : vector<8x128xf32>
    %cst_41 = arith.constant 1.000000e+00 : f32
    %168 = vector.broadcast %cst_41 : f32 to vector<8x128xf32>
    %169 = arith.addf %168, %167 : vector<8x128xf32>
    %170 = tpu.reciprocal %169 {approx = true} : vector<8x128xf32> -> vector<8x128xf32>
    %171 = math.tanh %164 : vector<8x128xf32>
    %172 = vector.extract_strided_slice %170 {offsets = [0, 0], sizes = [8, 32], strides = [1, 1]} : vector<8x128xf32> to vector<8x32xf32>
    %173 = vector.extract_strided_slice %170 {offsets = [0, 32], sizes = [8, 32], strides = [1, 1]} : vector<8x128xf32> to vector<8x32xf32>
    %174 = vector.extract_strided_slice %171 {offsets = [0, 64], sizes = [8, 32], strides = [1, 1]} : vector<8x128xf32> to vector<8x32xf32>
    %175 = vector.extract_strided_slice %170 {offsets = [0, 96], sizes = [8, 32], strides = [1, 1]} : vector<8x128xf32> to vector<8x32xf32>
    %176 = arith.mulf %173, %136 : vector<8x32xf32>
    %177 = arith.mulf %172, %174 : vector<8x32xf32>
    %178 = arith.addf %176, %177 : vector<8x32xf32>
    %179 = math.tanh %178 : vector<8x32xf32>
    %180 = arith.mulf %175, %179 : vector<8x32xf32>
    %181 = vector.extract_strided_slice %11 {offsets = [32, 0], sizes = [8, 128], strides = [1, 1]} : vector<64x128xf32> to vector<8x128xf32>
    %182 = arith.truncf %158 : vector<8x32xf32> to vector<8x32xbf16>
    %cst_42 = arith.constant dense<0.000000e+00> : vector<8x128xf32>
    %183 = tpu.matmul %182, %0, %cst_42 {dimension_numbers = #tpu.dot_dimension_numbers<[1], [0], [0], [1], [0, 0, 1, 1], [], []>} : vector<8x32xbf16>, vector<32x128xbf16>, vector<8x128xf32> -> vector<8x128xf32>
    %184 = arith.addf %181, %183 : vector<8x128xf32>
    %cst_43 = arith.constant 0.000000e+00 : f32
    %185 = vector.broadcast %cst_43 : f32 to vector<8x128xf32>
    %186 = arith.subf %185, %184 : vector<8x128xf32>
    %187 = math.exp %186 : vector<8x128xf32>
    %cst_44 = arith.constant 1.000000e+00 : f32
    %188 = vector.broadcast %cst_44 : f32 to vector<8x128xf32>
    %189 = arith.addf %188, %187 : vector<8x128xf32>
    %190 = tpu.reciprocal %189 {approx = true} : vector<8x128xf32> -> vector<8x128xf32>
    %191 = math.tanh %184 : vector<8x128xf32>
    %192 = vector.extract_strided_slice %190 {offsets = [0, 0], sizes = [8, 32], strides = [1, 1]} : vector<8x128xf32> to vector<8x32xf32>
    %193 = vector.extract_strided_slice %190 {offsets = [0, 32], sizes = [8, 32], strides = [1, 1]} : vector<8x128xf32> to vector<8x32xf32>
    %194 = vector.extract_strided_slice %191 {offsets = [0, 64], sizes = [8, 32], strides = [1, 1]} : vector<8x128xf32> to vector<8x32xf32>
    %195 = vector.extract_strided_slice %190 {offsets = [0, 96], sizes = [8, 32], strides = [1, 1]} : vector<8x128xf32> to vector<8x32xf32>
    %196 = arith.mulf %193, %156 : vector<8x32xf32>
    %197 = arith.mulf %192, %194 : vector<8x32xf32>
    %198 = arith.addf %196, %197 : vector<8x32xf32>
    %199 = math.tanh %198 : vector<8x32xf32>
    %200 = arith.mulf %195, %199 : vector<8x32xf32>
    %201 = arith.truncf %200 : vector<8x32xf32> to vector<8x32xbf16>
    %cst_45 = arith.constant dense<0.000000e+00> : vector<8x128xf32>
    %202 = tpu.matmul %201, %1, %cst_45 {dimension_numbers = #tpu.dot_dimension_numbers<[1], [0], [0], [1], [0, 0, 1, 1], [], []>} : vector<8x32xbf16>, vector<32x128xbf16>, vector<8x128xf32> -> vector<8x128xf32>
    %203 = arith.truncf %180 : vector<8x32xf32> to vector<8x32xbf16>
    %cst_46 = arith.constant dense<0.000000e+00> : vector<8x128xf32>
    %204 = tpu.matmul %203, %2, %cst_46 {dimension_numbers = #tpu.dot_dimension_numbers<[1], [0], [0], [1], [0, 0, 1, 1], [], []>} : vector<8x32xbf16>, vector<32x128xbf16>, vector<8x128xf32> -> vector<8x128xf32>
    %205 = arith.addf %202, %204 : vector<8x128xf32>
    %206 = arith.addf %205, %5 : vector<8x128xf32>
    %cst_47 = arith.constant 0.000000e+00 : f32
    %207 = vector.broadcast %cst_47 : f32 to vector<8x128xf32>
    %208 = arith.subf %207, %206 : vector<8x128xf32>
    %209 = math.exp %208 : vector<8x128xf32>
    %cst_48 = arith.constant 1.000000e+00 : f32
    %210 = vector.broadcast %cst_48 : f32 to vector<8x128xf32>
    %211 = arith.addf %210, %209 : vector<8x128xf32>
    %212 = tpu.reciprocal %211 {approx = true} : vector<8x128xf32> -> vector<8x128xf32>
    %213 = math.tanh %206 : vector<8x128xf32>
    %214 = vector.extract_strided_slice %212 {offsets = [0, 0], sizes = [8, 32], strides = [1, 1]} : vector<8x128xf32> to vector<8x32xf32>
    %215 = vector.extract_strided_slice %212 {offsets = [0, 32], sizes = [8, 32], strides = [1, 1]} : vector<8x128xf32> to vector<8x32xf32>
    %216 = vector.extract_strided_slice %213 {offsets = [0, 64], sizes = [8, 32], strides = [1, 1]} : vector<8x128xf32> to vector<8x32xf32>
    %217 = vector.extract_strided_slice %212 {offsets = [0, 96], sizes = [8, 32], strides = [1, 1]} : vector<8x128xf32> to vector<8x32xf32>
    %218 = arith.mulf %215, %178 : vector<8x32xf32>
    %219 = arith.mulf %214, %216 : vector<8x32xf32>
    %220 = arith.addf %218, %219 : vector<8x32xf32>
    %221 = math.tanh %220 : vector<8x32xf32>
    %222 = arith.mulf %217, %221 : vector<8x32xf32>
    %223 = vector.extract_strided_slice %11 {offsets = [40, 0], sizes = [8, 128], strides = [1, 1]} : vector<64x128xf32> to vector<8x128xf32>
    %224 = arith.truncf %200 : vector<8x32xf32> to vector<8x32xbf16>
    %cst_49 = arith.constant dense<0.000000e+00> : vector<8x128xf32>
    %225 = tpu.matmul %224, %0, %cst_49 {dimension_numbers = #tpu.dot_dimension_numbers<[1], [0], [0], [1], [0, 0, 1, 1], [], []>} : vector<8x32xbf16>, vector<32x128xbf16>, vector<8x128xf32> -> vector<8x128xf32>
    %226 = arith.addf %223, %225 : vector<8x128xf32>
    %cst_50 = arith.constant 0.000000e+00 : f32
    %227 = vector.broadcast %cst_50 : f32 to vector<8x128xf32>
    %228 = arith.subf %227, %226 : vector<8x128xf32>
    %229 = math.exp %228 : vector<8x128xf32>
    %cst_51 = arith.constant 1.000000e+00 : f32
    %230 = vector.broadcast %cst_51 : f32 to vector<8x128xf32>
    %231 = arith.addf %230, %229 : vector<8x128xf32>
    %232 = tpu.reciprocal %231 {approx = true} : vector<8x128xf32> -> vector<8x128xf32>
    %233 = math.tanh %226 : vector<8x128xf32>
    %234 = vector.extract_strided_slice %232 {offsets = [0, 0], sizes = [8, 32], strides = [1, 1]} : vector<8x128xf32> to vector<8x32xf32>
    %235 = vector.extract_strided_slice %232 {offsets = [0, 32], sizes = [8, 32], strides = [1, 1]} : vector<8x128xf32> to vector<8x32xf32>
    %236 = vector.extract_strided_slice %233 {offsets = [0, 64], sizes = [8, 32], strides = [1, 1]} : vector<8x128xf32> to vector<8x32xf32>
    %237 = vector.extract_strided_slice %232 {offsets = [0, 96], sizes = [8, 32], strides = [1, 1]} : vector<8x128xf32> to vector<8x32xf32>
    %238 = arith.mulf %235, %198 : vector<8x32xf32>
    %239 = arith.mulf %234, %236 : vector<8x32xf32>
    %240 = arith.addf %238, %239 : vector<8x32xf32>
    %241 = math.tanh %240 : vector<8x32xf32>
    %242 = arith.mulf %237, %241 : vector<8x32xf32>
    %243 = arith.truncf %242 : vector<8x32xf32> to vector<8x32xbf16>
    %cst_52 = arith.constant dense<0.000000e+00> : vector<8x128xf32>
    %244 = tpu.matmul %243, %1, %cst_52 {dimension_numbers = #tpu.dot_dimension_numbers<[1], [0], [0], [1], [0, 0, 1, 1], [], []>} : vector<8x32xbf16>, vector<32x128xbf16>, vector<8x128xf32> -> vector<8x128xf32>
    %245 = arith.truncf %222 : vector<8x32xf32> to vector<8x32xbf16>
    %cst_53 = arith.constant dense<0.000000e+00> : vector<8x128xf32>
    %246 = tpu.matmul %245, %2, %cst_53 {dimension_numbers = #tpu.dot_dimension_numbers<[1], [0], [0], [1], [0, 0, 1, 1], [], []>} : vector<8x32xbf16>, vector<32x128xbf16>, vector<8x128xf32> -> vector<8x128xf32>
    %247 = arith.addf %244, %246 : vector<8x128xf32>
    %248 = arith.addf %247, %5 : vector<8x128xf32>
    %cst_54 = arith.constant 0.000000e+00 : f32
    %249 = vector.broadcast %cst_54 : f32 to vector<8x128xf32>
    %250 = arith.subf %249, %248 : vector<8x128xf32>
    %251 = math.exp %250 : vector<8x128xf32>
    %cst_55 = arith.constant 1.000000e+00 : f32
    %252 = vector.broadcast %cst_55 : f32 to vector<8x128xf32>
    %253 = arith.addf %252, %251 : vector<8x128xf32>
    %254 = tpu.reciprocal %253 {approx = true} : vector<8x128xf32> -> vector<8x128xf32>
    %255 = math.tanh %248 : vector<8x128xf32>
    %256 = vector.extract_strided_slice %254 {offsets = [0, 0], sizes = [8, 32], strides = [1, 1]} : vector<8x128xf32> to vector<8x32xf32>
    %257 = vector.extract_strided_slice %254 {offsets = [0, 32], sizes = [8, 32], strides = [1, 1]} : vector<8x128xf32> to vector<8x32xf32>
    %258 = vector.extract_strided_slice %255 {offsets = [0, 64], sizes = [8, 32], strides = [1, 1]} : vector<8x128xf32> to vector<8x32xf32>
    %259 = vector.extract_strided_slice %254 {offsets = [0, 96], sizes = [8, 32], strides = [1, 1]} : vector<8x128xf32> to vector<8x32xf32>
    %260 = arith.mulf %257, %220 : vector<8x32xf32>
    %261 = arith.mulf %256, %258 : vector<8x32xf32>
    %262 = arith.addf %260, %261 : vector<8x32xf32>
    %263 = math.tanh %262 : vector<8x32xf32>
    %264 = arith.mulf %259, %263 : vector<8x32xf32>
    %265 = vector.extract_strided_slice %11 {offsets = [48, 0], sizes = [8, 128], strides = [1, 1]} : vector<64x128xf32> to vector<8x128xf32>
    %266 = arith.truncf %242 : vector<8x32xf32> to vector<8x32xbf16>
    %cst_56 = arith.constant dense<0.000000e+00> : vector<8x128xf32>
    %267 = tpu.matmul %266, %0, %cst_56 {dimension_numbers = #tpu.dot_dimension_numbers<[1], [0], [0], [1], [0, 0, 1, 1], [], []>} : vector<8x32xbf16>, vector<32x128xbf16>, vector<8x128xf32> -> vector<8x128xf32>
    %268 = arith.addf %265, %267 : vector<8x128xf32>
    %cst_57 = arith.constant 0.000000e+00 : f32
    %269 = vector.broadcast %cst_57 : f32 to vector<8x128xf32>
    %270 = arith.subf %269, %268 : vector<8x128xf32>
    %271 = math.exp %270 : vector<8x128xf32>
    %cst_58 = arith.constant 1.000000e+00 : f32
    %272 = vector.broadcast %cst_58 : f32 to vector<8x128xf32>
    %273 = arith.addf %272, %271 : vector<8x128xf32>
    %274 = tpu.reciprocal %273 {approx = true} : vector<8x128xf32> -> vector<8x128xf32>
    %275 = math.tanh %268 : vector<8x128xf32>
    %276 = vector.extract_strided_slice %274 {offsets = [0, 0], sizes = [8, 32], strides = [1, 1]} : vector<8x128xf32> to vector<8x32xf32>
    %277 = vector.extract_strided_slice %274 {offsets = [0, 32], sizes = [8, 32], strides = [1, 1]} : vector<8x128xf32> to vector<8x32xf32>
    %278 = vector.extract_strided_slice %275 {offsets = [0, 64], sizes = [8, 32], strides = [1, 1]} : vector<8x128xf32> to vector<8x32xf32>
    %279 = vector.extract_strided_slice %274 {offsets = [0, 96], sizes = [8, 32], strides = [1, 1]} : vector<8x128xf32> to vector<8x32xf32>
    %280 = arith.mulf %277, %240 : vector<8x32xf32>
    %281 = arith.mulf %276, %278 : vector<8x32xf32>
    %282 = arith.addf %280, %281 : vector<8x32xf32>
    %283 = math.tanh %282 : vector<8x32xf32>
    %284 = arith.mulf %279, %283 : vector<8x32xf32>
    %285 = arith.truncf %284 : vector<8x32xf32> to vector<8x32xbf16>
    %cst_59 = arith.constant dense<0.000000e+00> : vector<8x128xf32>
    %286 = tpu.matmul %285, %1, %cst_59 {dimension_numbers = #tpu.dot_dimension_numbers<[1], [0], [0], [1], [0, 0, 1, 1], [], []>} : vector<8x32xbf16>, vector<32x128xbf16>, vector<8x128xf32> -> vector<8x128xf32>
    %287 = arith.truncf %264 : vector<8x32xf32> to vector<8x32xbf16>
    %cst_60 = arith.constant dense<0.000000e+00> : vector<8x128xf32>
    %288 = tpu.matmul %287, %2, %cst_60 {dimension_numbers = #tpu.dot_dimension_numbers<[1], [0], [0], [1], [0, 0, 1, 1], [], []>} : vector<8x32xbf16>, vector<32x128xbf16>, vector<8x128xf32> -> vector<8x128xf32>
    %289 = arith.addf %286, %288 : vector<8x128xf32>
    %290 = arith.addf %289, %5 : vector<8x128xf32>
    %cst_61 = arith.constant 0.000000e+00 : f32
    %291 = vector.broadcast %cst_61 : f32 to vector<8x128xf32>
    %292 = arith.subf %291, %290 : vector<8x128xf32>
    %293 = math.exp %292 : vector<8x128xf32>
    %cst_62 = arith.constant 1.000000e+00 : f32
    %294 = vector.broadcast %cst_62 : f32 to vector<8x128xf32>
    %295 = arith.addf %294, %293 : vector<8x128xf32>
    %296 = tpu.reciprocal %295 {approx = true} : vector<8x128xf32> -> vector<8x128xf32>
    %297 = math.tanh %290 : vector<8x128xf32>
    %298 = vector.extract_strided_slice %296 {offsets = [0, 0], sizes = [8, 32], strides = [1, 1]} : vector<8x128xf32> to vector<8x32xf32>
    %299 = vector.extract_strided_slice %296 {offsets = [0, 32], sizes = [8, 32], strides = [1, 1]} : vector<8x128xf32> to vector<8x32xf32>
    %300 = vector.extract_strided_slice %297 {offsets = [0, 64], sizes = [8, 32], strides = [1, 1]} : vector<8x128xf32> to vector<8x32xf32>
    %301 = vector.extract_strided_slice %296 {offsets = [0, 96], sizes = [8, 32], strides = [1, 1]} : vector<8x128xf32> to vector<8x32xf32>
    %302 = arith.mulf %299, %262 : vector<8x32xf32>
    %303 = arith.mulf %298, %300 : vector<8x32xf32>
    %304 = arith.addf %302, %303 : vector<8x32xf32>
    %305 = math.tanh %304 : vector<8x32xf32>
    %306 = arith.mulf %301, %305 : vector<8x32xf32>
    %307 = vector.extract_strided_slice %11 {offsets = [56, 0], sizes = [8, 128], strides = [1, 1]} : vector<64x128xf32> to vector<8x128xf32>
    %308 = arith.truncf %284 : vector<8x32xf32> to vector<8x32xbf16>
    %cst_63 = arith.constant dense<0.000000e+00> : vector<8x128xf32>
    %309 = tpu.matmul %308, %0, %cst_63 {dimension_numbers = #tpu.dot_dimension_numbers<[1], [0], [0], [1], [0, 0, 1, 1], [], []>} : vector<8x32xbf16>, vector<32x128xbf16>, vector<8x128xf32> -> vector<8x128xf32>
    %310 = arith.addf %307, %309 : vector<8x128xf32>
    %cst_64 = arith.constant 0.000000e+00 : f32
    %311 = vector.broadcast %cst_64 : f32 to vector<8x128xf32>
    %312 = arith.subf %311, %310 : vector<8x128xf32>
    %313 = math.exp %312 : vector<8x128xf32>
    %cst_65 = arith.constant 1.000000e+00 : f32
    %314 = vector.broadcast %cst_65 : f32 to vector<8x128xf32>
    %315 = arith.addf %314, %313 : vector<8x128xf32>
    %316 = tpu.reciprocal %315 {approx = true} : vector<8x128xf32> -> vector<8x128xf32>
    %317 = math.tanh %310 : vector<8x128xf32>
    %318 = vector.extract_strided_slice %316 {offsets = [0, 0], sizes = [8, 32], strides = [1, 1]} : vector<8x128xf32> to vector<8x32xf32>
    %319 = vector.extract_strided_slice %316 {offsets = [0, 32], sizes = [8, 32], strides = [1, 1]} : vector<8x128xf32> to vector<8x32xf32>
    %320 = vector.extract_strided_slice %317 {offsets = [0, 64], sizes = [8, 32], strides = [1, 1]} : vector<8x128xf32> to vector<8x32xf32>
    %321 = vector.extract_strided_slice %316 {offsets = [0, 96], sizes = [8, 32], strides = [1, 1]} : vector<8x128xf32> to vector<8x32xf32>
    %322 = arith.mulf %319, %282 : vector<8x32xf32>
    %323 = arith.mulf %318, %320 : vector<8x32xf32>
    %324 = arith.addf %322, %323 : vector<8x32xf32>
    %325 = math.tanh %324 : vector<8x32xf32>
    %326 = arith.mulf %321, %325 : vector<8x32xf32>
    %327 = arith.truncf %326 : vector<8x32xf32> to vector<8x32xbf16>
    %cst_66 = arith.constant dense<0.000000e+00> : vector<8x128xf32>
    %328 = tpu.matmul %327, %1, %cst_66 {dimension_numbers = #tpu.dot_dimension_numbers<[1], [0], [0], [1], [0, 0, 1, 1], [], []>} : vector<8x32xbf16>, vector<32x128xbf16>, vector<8x128xf32> -> vector<8x128xf32>
    %329 = arith.truncf %306 : vector<8x32xf32> to vector<8x32xbf16>
    %cst_67 = arith.constant dense<0.000000e+00> : vector<8x128xf32>
    %330 = tpu.matmul %329, %2, %cst_67 {dimension_numbers = #tpu.dot_dimension_numbers<[1], [0], [0], [1], [0, 0, 1, 1], [], []>} : vector<8x32xbf16>, vector<32x128xbf16>, vector<8x128xf32> -> vector<8x128xf32>
    %331 = arith.addf %328, %330 : vector<8x128xf32>
    %332 = arith.addf %331, %5 : vector<8x128xf32>
    %cst_68 = arith.constant 0.000000e+00 : f32
    %333 = vector.broadcast %cst_68 : f32 to vector<8x128xf32>
    %334 = arith.subf %333, %332 : vector<8x128xf32>
    %335 = math.exp %334 : vector<8x128xf32>
    %cst_69 = arith.constant 1.000000e+00 : f32
    %336 = vector.broadcast %cst_69 : f32 to vector<8x128xf32>
    %337 = arith.addf %336, %335 : vector<8x128xf32>
    %338 = tpu.reciprocal %337 {approx = true} : vector<8x128xf32> -> vector<8x128xf32>
    %339 = math.tanh %332 : vector<8x128xf32>
    %340 = vector.extract_strided_slice %338 {offsets = [0, 0], sizes = [8, 32], strides = [1, 1]} : vector<8x128xf32> to vector<8x32xf32>
    %341 = vector.extract_strided_slice %338 {offsets = [0, 32], sizes = [8, 32], strides = [1, 1]} : vector<8x128xf32> to vector<8x32xf32>
    %342 = vector.extract_strided_slice %339 {offsets = [0, 64], sizes = [8, 32], strides = [1, 1]} : vector<8x128xf32> to vector<8x32xf32>
    %343 = vector.extract_strided_slice %338 {offsets = [0, 96], sizes = [8, 32], strides = [1, 1]} : vector<8x128xf32> to vector<8x32xf32>
    %344 = arith.mulf %341, %304 : vector<8x32xf32>
    %345 = arith.mulf %340, %342 : vector<8x32xf32>
    %346 = arith.addf %344, %345 : vector<8x32xf32>
    %347 = math.tanh %346 : vector<8x32xf32>
    %348 = arith.mulf %343, %347 : vector<8x32xf32>
    %349 = arith.truncf %348 : vector<8x32xf32> to vector<8x32xbf16>
    %c0_70 = arith.constant 0 : index
    %c0_71 = arith.constant 0 : index
    %350 = vector.load %arg7[%c0_70, %c0_71] : memref<32x128xbf16, #tpu.memory_space<vmem>>, vector<32x128xbf16>
    %cst_72 = arith.constant dense<0.000000e+00> : vector<8x128xf32>
    %351 = tpu.matmul %349, %350, %cst_72 {dimension_numbers = #tpu.dot_dimension_numbers<[1], [0], [0], [1], [0, 0, 1, 1], [], []>} : vector<8x32xbf16>, vector<32x128xbf16>, vector<8x128xf32> -> vector<8x128xf32>
    %c0_73 = arith.constant 0 : index
    %c0_74 = arith.constant 0 : index
    %352 = vector.load %arg8[%c0_73, %c0_74] : memref<1x128xf32, #tpu.memory_space<vmem>>, vector<1x128xf32>
    %353 = vector.broadcast %352 : vector<1x128xf32> to vector<8x128xf32>
    %354 = arith.addf %351, %353 : vector<8x128xf32>
    %c0_75 = arith.constant 0 : index
    %c0_76 = arith.constant 0 : index
    %355 = vector.load %arg9[%c0_75, %c0_76] : memref<8x128xf32, #tpu.memory_space<vmem>>, vector<8x128xf32>
    tpu.vector_store %arg9[%c0_75, %c0_76], %354 {strides = array<i32>} : memref<8x128xf32, #tpu.memory_space<vmem>>, vector<8x128xf32>,
    return
  }
}

</mosaic_0001>

<bundles_post_ra>
// kernel: lstm_pallas.1
= control target key start
LH: loop header
LB: loop body
LE: loop exit
PB: predicated region body
PF: predicated region fallthrough
CT: control target
= control target key end

     0   :  { %v2224_v0 = vmov 0.0   ;;  %vm2225_vm0 = vmmov 0   ;;  %vm95_vm1 = vcmask 130048   ;;  %v2226_v6 = vmov 0   ;;  %s2227_s20 = smov 64   ;;  %s2228_s21 = smov 32   ;;  %s2687_s1 = inlined_call_operand.vmem [shape: bf16[16,128], index: 1, kind: input, shape index: {}]   ;;  %s2688_s3 = inlined_call_operand.vmem [shape: bf16[32,128], index: 3, kind: input, shape index: {}]   ;;  %s2689_s0 = inlined_call_operand.vmem [shape: bf16[64,16], index: 0, kind: input, shape index: {}]   ;;  %s2690_s2 = inlined_call_operand.vmem [shape: f32[1,128], index: 2, kind: input, shape index: {}]   ;;  %s2691_s5 = inlined_call_operand.vmem [shape: bf16[32,128], index: 5, kind: input, shape index: {}]   ;;  %s2692_s4 = inlined_call_operand.vmem [shape: bf16[32,128], index: 4, kind: input, shape index: {}]   ;;  %s2693_s6 = inlined_call_operand.vmem [shape: f32[1,128], index: 6, kind: input, shape index: {}]   ;;  %s2694_s7 = inlined_call_operand.vmem [shape: bf16[32,128], index: 7, kind: input, shape index: {}]   ;;  %s2695_s8 = inlined_call_operand.vmem [shape: f32[1,128], index: 8, kind: input, shape index: {}]   ;;  %s2696_s9 = inlined_call_operand.vmem [shape: f32[8,128], index: 9, kind: output, shape index: {}]  }
   0x1   :  { %1870 = vmatprep.subr.bf16.mxu1 %v2224_v0  ;;  %v2075_v1 = vld [vmem:[%s2687_s1] sm:$0xff]   ;;  %1874 = vmatprep.mubr.msk.bf16.mxu1 %vm2225_vm0, %v2224_v0  ;;  %v2288_v2 = vld [vmem:[%s2688_s3 + $0x8] sm:$0xff]   ;;  %v2082_v27 = vld [vmem:[%s2689_s0 + $0x10] sm:$0xff]   ;;  %vm185_vm2 = vcmask 261120  }
   0x2   :  { %1860 = vmatprep.subr.bf16.mxu0 %v2075_v1  ;;  %v2077_v3 = vld [vmem:[%s2689_s0] sm:$0xff]   ;;  %1871 = vmatpush3.bf16.msra.mxu1 %v2288_v2  ;;  %v2078_v4 = vld [vmem:[%s2689_s0 + $0x8] sm:$0xff]   ;;  %v2084_v28 = vld [vmem:[%s2689_s0 + $0x18] sm:$0xff]  }
   0x3   :  { %1861 = vmatpush3.bf16.msra.mxu0 %v2075_v1  ;;  %1862 = vmatprep.mubr.msk.bf16.mxu0 %vm95_vm1, %v2077_v3  ;;  %v2302_v5 = vld [vmem:[%s2688_s3] sm:$0xff]   ;;  %v2332_v29 = vld [vmem:[%s2691_s5 + $0x8] sm:$0xff]  }
   0x4   :  { %1872 = vmatprep.subr.bf16.mxu1 %v2224_v0  ;;  %1886 = vmatprep.subr.bf16.mxu0 %v2224_v0  ;;  %v2315_v8 = vld [vmem:[%s2690_s2] ss:$0 sm:$0xff]  ;;  %v2337_v30 = vld [vmem:[%s2692_s4 + $0x8] sm:$0xff]  }
   0x5   :  { %v2344_v31 = vld [vmem:[%s2691_s5] sm:$0xff]  }
   0x6   :  { %1863 = vmatmul.mubr.msk.bf16.vlgmr.msra.gmra.mxu0 %vm95_vm1, %v2078_v4  ;;  %1873 = vmatpush3.bf16.msra.mxu1 %v2302_v5  ;;  %v2352_v32 = vld [vmem:[%s2692_s4] sm:$0xff]  }
   0x7   :  { %1878 = vmatprep.subr.bf16.mxu1 %v2224_v0  ;;  %1866 = vmatprep.mubr.msk.bf16.mxu0 %vm95_vm1, %v2082_v27  ;;  %v2397_v49 = vld [vmem:[%s2693_s6] ss:$0 sm:$0xff] }
   0x8   :  { %1887 = vmatpush3.bf16.msra.mxu0 %v2337_v30 }
   0x9   :  { %1875 = vmatmul.mubr.bf16.vlgmr.msra.gmra.mxu1 %v2226_v6  ;;  %1888 = vmatprep.subr.bf16.mxu0 %v2224_v0 }
   0xa   :  { %1882 = vmatprep.mubr.msk.bf16.mxu1 %vm2225_vm0, %v2224_v0  ;;  %1879 = vmatpush3.bf16.msra.mxu1 %v2332_v29 }
   0xb   :  { %1880 = vmatprep.subr.bf16.mxu1 %v2224_v0 }
   0xc   :  { %1889 = vmatpush3.bf16.msra.mxu0 %v2352_v32 }
   0xd   :  { %1902 = vmatprep.subr.bf16.mxu0 %v2224_v0 }
   0xe   :  { %1867 = vmatmul.mubr.msk.bf16.gmra.mxu0 %vm95_vm1, %v2084_v28  ;;  %1881 = vmatpush3.bf16.msra.mxu1 %v2344_v31 }
   0xf   :  { %1890 = vmatprep.mubr.msk.bf16.mxu0 %vm2225_vm0, %v2224_v0  ;;  %1894 = vmatprep.subr.bf16.mxu1 %v2224_v0 }
  0x11   :  { %1883 = vmatmul.mubr.bf16.vlgmr.msra.gmra.mxu1 %v2226_v6 }
  0x12   :  { %1895 = vmatpush3.bf16.msra.mxu1 %v2288_v2  ;;  %1898 = vmatprep.mubr.msk.bf16.mxu1 %vm2225_vm0, %v2224_v0 }
  0x13   :  { %1896 = vmatprep.subr.bf16.mxu1 %v2224_v0 }
  0x16   :  { %1897 = vmatpush3.bf16.msra.mxu1 %v2302_v5 }
  0x17   :  { %1910 = vmatprep.subr.bf16.mxu1 %v2224_v0 }
  0xc6   :  { %v2310_v7 = vpop.f32.mrf.mxu0 }
  0xc8   :  { %v142_v9 = vpop.f32.mrf.mxu0 }
  0xc9   :  { %v143_v10 = vadd.f32 %v2315_v8, %v142_v9  ;;  %v223_v11 = vpop.f32.mrf.mxu1 }
  0xca   :  { %v2383_v42 = vpop.f32.mrf.mxu0 }
  0xcb   :  { %v229_v12 = vadd.f32 %v223_v11, %v143_v10  ;;  %v1876_v13 = vpop.f32.mrf.mxu1 }
  0xcc   :  { %v145_v43 = vpop.f32.mrf.mxu0 }
  0xcd   :  { %2088 = vtanh.f32 %v229_v12  ;;  %v226_v14 = vpop.f32.mrf.mxu1  ;;  %v230_v17 = vsub.f32 0.0, %v229_v12  ;;  %v146_v48 = vadd.f32 %v2315_v8, %v145_v43 }
  0xce   :  { %v2385_v44 = vpop.f32.mrf.mxu0 }
  0xcf   :  { %v1877_v15 = vpop.f32.mrf.mxu1  ;;  %v231_v18 = vmul.f32 1.442695, %v230_v17 }
  0xd0   :  { %v2387_v45 = vpop.f32.mrf.mxu0 }
  0xd1   :  { %2090 = vpow2.f32 %v231_v18  ;;  %v300_v37 = vpop.f32.mrf.mxu1 }
  0xd2   :  { %v2389_v46 = vpop.f32.mrf.mxu0 }
  0xd3   :  { %v1884_v38 = vpop.f32.mrf.mxu1 }
  0xd4   :  { %v2391_v47 = vpop.f32.mrf.mxu0 }
  0xd5   :  { %v303_v39 = vpop.f32.mrf.mxu1 }
  0xd7   :  { %v1885_v40 = vpop.f32.mrf.mxu1 }
  0xda   :  { %v2089_v16 = vpop.eup %2088 }
  0xdb   :  { %238 = vrot.lane.b32.xlu0 %v2089_v16, %s2227_s20 }
  0xde   :  { %v2091_v19 = vpop.eup %2090 }
  0xdf   :  { %v233_v20 = vadd.f32 1.0, %v2091_v19 }
  0xe1   :  { %2092 = vrcp.f32 %v233_v20 }
  0xee   :  { %v2093_v21 = vpop.eup %2092 }
  0xef   :  { %v236_v24 = vmul.f32 0.0, %v2093_v21 }
 0x14d   :  { %v239_v22 = vpop.permute.xlu0 %238 }
 0x14e   :  { %v241_v23 = vmul.f32 %v2093_v21, %v239_v22 }
 0x150   :  { %243 = vrot.lane.b32.xlu0 %v241_v23, %s2228_s21 }
 0x1c2   :  { %v244_v25 = vpop.permute.xlu0 %243 }
 0x1c3   :  { %v2320_v26 = vadd.f32 %v244_v25, %v236_v24 }
 0x1c5   :  { %2094 = vtanh.f32 %v2320_v26 }
 0x1d2   :  { %v2095_v33 = vpop.eup %2094 }
 0x1d3   :  { %249 = vrot.lane.b32.xlu1 %v2095_v33, %s2227_s20 }
 0x245   :  { %v250_v34 = vpop.permute.xlu1 %249 }
 0x246   :  { %v252_v35 = vmul.f32 %v2093_v21, %v250_v34 }
 0x248   :  { %v253_v36 = vpack.c.bf16 %v252_v35, %v252_v35 }
 0x24a   :  { %307 = vrot.lane.b32.xlu1 %v253_v36, %s2228_s21 }
 0x2bc   :  { %v308_v41 = vpop.permute.xlu1 %307 }
 0x2bd   :  { %1891 = vmatmul.mubr.msk.bf16.vlgmr.msra.gmra.mxu0 %vm185_vm2, %v308_v41  ;;  %1899 = vmatmul.mubr.msk.bf16.vlgmr.msra.gmra.mxu1 %vm185_vm2, %v308_v41 }
 0x2be   :  { %1911 = vmatpush3.bf16.msra.mxu1 %v2337_v30  ;;  %1903 = vmatpush3.bf16.msra.mxu0 %v2332_v29 }
 0x2bf   :  { %1912 = vmatprep.subr.bf16.mxu1 %v2224_v0  ;;  %1904 = vmatprep.subr.bf16.mxu0 %v2224_v0 }
 0x2c0   :  { %1914 = vmatprep.mubr.msk.bf16.mxu1 %vm2225_vm0, %v2224_v0  ;;  %1906 = vmatprep.mubr.msk.bf16.mxu0 %vm2225_vm0, %v2224_v0 }
 0x2c2   :  { %1913 = vmatpush3.bf16.msra.mxu1 %v2352_v32  ;;  %1905 = vmatpush3.bf16.msra.mxu0 %v2344_v31 }
 0x2c3   :  { %1918 = vmatprep.subr.bf16.mxu0 %v2224_v0  ;;  %1926 = vmatprep.subr.bf16.mxu1 %v2224_v0 }
 0x37d   :  { %v358_v50 = vpop.f32.mrf.mxu0  ;;  %v422_v51 = vpop.f32.mrf.mxu1 }
 0x37e   :  { %v359_v52 = vadd.f32 %v358_v50, %v300_v37  ;;  %v428_v53 = vadd.f32 %v422_v51, %v146_v48 }
 0x37f   :  { %v1892_v54 = vpop.f32.mrf.mxu0  ;;  %v1900_v55 = vpop.f32.mrf.mxu1 }
 0x380   :  { %v364_v56 = vadd.f32 %v2397_v49, %v359_v52  ;;  %2096 = vtanh.f32 %v428_v53  ;;  %v429_v63 = vsub.f32 0.0, %v428_v53  ;;  %v151_v54 = vadd.f32 %v2310_v7, %v2315_v8 }
 0x381   :  { %v361_v57 = vpop.f32.mrf.mxu0  ;;  %v425_v58 = vpop.f32.mrf.mxu1 }
 0x382   :  { %2098 = vtanh.f32 %v364_v56  ;;  %v365_v1 = vsub.f32 0.0, %v364_v56  ;;  %v430_v3 = vmul.f32 1.442695, %v429_v63 }
 0x383   :  { %v1893_v59 = vpop.f32.mrf.mxu0  ;;  %v1901_v60 = vpop.f32.mrf.mxu1 }
 0x384   :  { %v366_v4 = vmul.f32 1.442695, %v365_v1  ;;  %2100 = vpow2.f32 %v430_v3 }
 0x386   :  { %2102 = vpow2.f32 %v366_v4 }
 0x38d   :  { %v2097_v61 = vpop.eup %2096 }
 0x38e   :  { %437 = vrot.lane.b32.xlu1 %v2097_v61, %s2227_s20 }
 0x38f   :  { %v2099_v62 = vpop.eup %2098 }
 0x390   :  { %373 = vrot.lane.b32.xlu0 %v2099_v62, %s2227_s20 }
 0x391   :  { %v2101_v6 = vpop.eup %2100 }
 0x392   :  { %v432_v10 = vadd.f32 1.0, %v2101_v6 }
 0x393   :  { %v2103_v9 = vpop.eup %2102 }
 0x394   :  { %v368_v11 = vadd.f32 1.0, %v2103_v9  ;;  %2104 = vrcp.f32 %v432_v10 }
 0x396   :  { %2106 = vrcp.f32 %v368_v11 }
 0x3a1   :  { %v2105_v12 = vpop.eup %2104 }
 0x3a2   :  { %v435_v18 = vmul.f32 %v2105_v12, %v2320_v26 }
 0x3a3   :  { %v2107_v15 = vpop.eup %2106 }
 0x3a4   :  { %v371_v21 = vmul.f32 0.0, %v2107_v15 }
 0x400   :  { %v438_v13 = vpop.permute.xlu1 %437 }
 0x401   :  { %v440_v14 = vmul.f32 %v2105_v12, %v438_v13 }
 0x402   :  { %v374_v16 = vpop.permute.xlu0 %373 }
 0x403   :  { %v376_v17 = vmul.f32 %v2107_v15, %v374_v16  ;;  %442 = vrot.lane.b32.xlu1 %v440_v14, %s2228_s21 }
 0x405   :  { %378 = vrot.lane.b32.xlu0 %v376_v17, %s2228_s21 }
 0x475   :  { %v443_v19 = vpop.permute.xlu1 %442 }
 0x476   :  { %v2405_v20 = vadd.f32 %v443_v19, %v435_v18 }
 0x477   :  { %v379_v22 = vpop.permute.xlu0 %378 }
 0x478   :  { %2108 = vtanh.f32 %v2405_v20  ;;  %v2408_v23 = vadd.f32 %v379_v22, %v371_v21 }
 0x47a   :  { %2110 = vtanh.f32 %v2408_v23 }
 0x485   :  { %v2109_v24 = vpop.eup %2108 }
 0x486   :  { %448 = vrot.lane.b32.xlu1 %v2109_v24, %s2227_s20 }
 0x487   :  { %v2111_v25 = vpop.eup %2110 }
 0x488   :  { %384 = vrot.lane.b32.xlu0 %v2111_v25, %s2227_s20 }
 0x4f8   :  { %v449_v27 = vpop.permute.xlu1 %448 }
 0x4f9   :  { %v451_v28 = vmul.f32 %v2105_v12, %v449_v27 }
 0x4fa   :  { %v385_v26 = vpop.permute.xlu0 %384 }
 0x4fb   :  { %v452_v33 = vpack.c.bf16 %v451_v28, %v451_v28  ;;  %v387_v34 = vmul.f32 %v2107_v15, %v385_v26 }
 0x4fd   :  { %v453_v35 = vpack.c.bf16 %v387_v34, %v387_v34  ;;  %501 = vrot.lane.b32.xlu1 %v452_v33, %s2228_s21 }
 0x4ff   :  { %455 = vrot.lane.b32.xlu0 %v453_v35, %s2228_s21 }
 0x56f   :  { %v502_v36 = vpop.permute.xlu1 %501 }
 0x570   :  { %1915 = vmatmul.mubr.msk.bf16.vlgmr.msra.gmra.mxu1 %vm185_vm2, %v502_v36 }
 0x571   :  { %v456_v37 = vpop.permute.xlu0 %455  ;;  %1927 = vmatpush3.bf16.msra.mxu1 %v2332_v29  ;;  %1930 = vmatprep.mubr.msk.bf16.mxu1 %vm2225_vm0, %v2224_v0 }
 0x572   :  { %1907 = vmatmul.mubr.msk.bf16.vlgmr.msra.gmra.mxu0 %vm185_vm2, %v456_v37  ;;  %1928 = vmatprep.subr.bf16.mxu1 %v2224_v0 }
 0x573   :  { %1919 = vmatpush3.bf16.msra.mxu0 %v2288_v2  ;;  %1922 = vmatprep.mubr.msk.bf16.mxu0 %vm2225_vm0, %v2224_v0 }
 0x574   :  { %1920 = vmatprep.subr.bf16.mxu0 %v2224_v0 }
 0x575   :  { %1929 = vmatpush3.bf16.msra.mxu1 %v2344_v31 }
 0x576   :  { %1942 = vmatprep.subr.bf16.mxu1 %v2224_v0 }
 0x577   :  { %1921 = vmatpush3.bf16.msra.mxu0 %v2302_v5 }
 0x578   :  { %1934 = vmatprep.subr.bf16.mxu0 %v2224_v0 }
 0x57a   :  { %1923 = vmatmul.mubr.msk.bf16.vlgmr.msra.gmra.mxu0 %vm185_vm2, %v502_v36 }
 0x57b   :  { %1935 = vmatpush3.bf16.msra.mxu0 %v2337_v30  ;;  %1938 = vmatprep.mubr.msk.bf16.mxu0 %vm2225_vm0, %v2224_v0 }
 0x57c   :  { %1936 = vmatprep.subr.bf16.mxu0 %v2224_v0 }
 0x57f   :  { %1937 = vmatpush3.bf16.msra.mxu0 %v2352_v32 }
 0x580   :  { %1950 = vmatprep.subr.bf16.mxu0 %v2224_v0 }
 0x630   :  { %v540_v38 = vpop.f32.mrf.mxu1 }
 0x632   :  { %v494_v39 = vpop.f32.mrf.mxu0  ;;  %v1916_v40 = vpop.f32.mrf.mxu1 }
 0x633   :  { %v541_v41 = vadd.f32 %v540_v38, %v494_v39 }
 0x634   :  { %v1908_v43 = vpop.f32.mrf.mxu0  ;;  %v543_v48 = vpop.f32.mrf.mxu1 }
 0x635   :  { %v546_v50 = vadd.f32 %v2397_v49, %v541_v41  ;;  %v154_v41 = vadd.f32 %v2383_v42, %v2315_v8 }
 0x636   :  { %v497_v51 = vpop.f32.mrf.mxu0  ;;  %v1917_v52 = vpop.f32.mrf.mxu1 }
 0x637   :  { %2112 = vtanh.f32 %v546_v50  ;;  %v547_v62 = vsub.f32 0.0, %v546_v50 }
 0x638   :  { %v1909_v53 = vpop.f32.mrf.mxu0 }
 0x639   :  { %v548_v63 = vmul.f32 1.442695, %v547_v62 }
 0x63a   :  { %v604_v55 = vpop.f32.mrf.mxu0 }
 0x63b   :  { %v610_v56 = vadd.f32 %v604_v55, %v151_v54 }
 0x63c   :  { %v1924_v57 = vpop.f32.mrf.mxu0 }
 0x63d   :  { %2114 = vtanh.f32 %v610_v56  ;;  %v611_v1 = vsub.f32 0.0, %v610_v56 }
 0x63e   :  { %v607_v58 = vpop.f32.mrf.mxu0  ;;  %2116 = vpow2.f32 %v548_v63 }
 0x63f   :  { %v612_v3 = vmul.f32 1.442695, %v611_v1 }
 0x640   :  { %v1925_v59 = vpop.f32.mrf.mxu0 }
 0x641   :  { %2118 = vpow2.f32 %v612_v3 }
 0x644   :  { %v2113_v60 = vpop.eup %2112 }
 0x645   :  { %555 = vrot.lane.b32.xlu0 %v2113_v60, %s2227_s20 }
 0x64a   :  { %v2115_v61 = vpop.eup %2114 }
 0x64b   :  { %619 = vrot.lane.b32.xlu1 %v2115_v61, %s2227_s20  ;;  %v2117_v4 = vpop.eup %2116 }
 0x64c   :  { %v550_v7 = vadd.f32 1.0, %v2117_v4 }
 0x64e   :  { %v2119_v6 = vpop.eup %2118  ;;  %2120 = vrcp.f32 %v550_v7 }
 0x64f   :  { %v614_v9 = vadd.f32 1.0, %v2119_v6 }
 0x651   :  { %2122 = vrcp.f32 %v614_v9 }
 0x65b   :  { %v2121_v10 = vpop.eup %2120 }
 0x65c   :  { %v553_v16 = vmul.f32 %v2121_v10, %v2408_v23 }
 0x65e   :  { %v2123_v13 = vpop.eup %2122 }
 0x65f   :  { %v617_v19 = vmul.f32 %v2123_v13, %v2405_v20 }
 0x6b7   :  { %v556_v11 = vpop.permute.xlu0 %555 }
 0x6b8   :  { %v558_v12 = vmul.f32 %v2121_v10, %v556_v11 }
 0x6ba   :  { %560 = vrot.lane.b32.xlu0 %v558_v12, %s2228_s21 }
 0x6bd   :  { %v620_v14 = vpop.permute.xlu1 %619 }
 0x6be   :  { %v622_v15 = vmul.f32 %v2123_v13, %v620_v14 }
 0x6c0   :  { %624 = vrot.lane.b32.xlu1 %v622_v15, %s2228_s21 }
 0x72c   :  { %v561_v17 = vpop.permute.xlu0 %560 }
 0x72d   :  { %v2444_v18 = vadd.f32 %v561_v17, %v553_v16 }
 0x72f   :  { %2124 = vtanh.f32 %v2444_v18 }
 0x732   :  { %v625_v21 = vpop.permute.xlu1 %624 }
 0x733   :  { %v2448_v22 = vadd.f32 %v625_v21, %v617_v19 }
 0x735   :  { %2126 = vtanh.f32 %v2448_v22 }
 0x73c   :  { %v2125_v24 = vpop.eup %2124 }
 0x73d   :  { %566 = vrot.lane.b32.xlu0 %v2125_v24, %s2227_s20 }
 0x742   :  { %v2127_v25 = vpop.eup %2126 }
 0x743   :  { %630 = vrot.lane.b32.xlu1 %v2127_v25, %s2227_s20 }
 0x7af   :  { %v567_v27 = vpop.permute.xlu0 %566 }
 0x7b0   :  { %v569_v23 = vmul.f32 %v2121_v10, %v567_v27 }
 0x7b2   :  { %v635_v28 = vpack.c.bf16 %v569_v23, %v569_v23 }
 0x7b4   :  { %637 = vrot.lane.b32.xlu0 %v635_v28, %s2228_s21 }
 0x7b5   :  { %v631_v26 = vpop.permute.xlu1 %630 }
 0x7b6   :  { %v633_v33 = vmul.f32 %v2123_v13, %v631_v26 }
 0x7b8   :  { %v634_v34 = vpack.c.bf16 %v633_v33, %v633_v33 }
 0x7ba   :  { %683 = vrot.lane.b32.xlu1 %v634_v34, %s2228_s21 }
 0x826   :  { %v638_v20 = vpop.permute.xlu0 %637 }
 0x827   :  { %1931 = vmatmul.mubr.msk.bf16.vlgmr.msra.gmra.mxu1 %vm185_vm2, %v638_v20 }
 0x828   :  { %1943 = vmatpush3.bf16.msra.mxu1 %v2288_v2  ;;  %1946 = vmatprep.mubr.msk.bf16.mxu1 %vm2225_vm0, %v2224_v0 }
 0x829   :  { %1944 = vmatprep.subr.bf16.mxu1 %v2224_v0 }
 0x82c   :  { %1945 = vmatpush3.bf16.msra.mxu1 %v2302_v5  ;;  %v684_v35 = vpop.permute.xlu1 %683 }
 0x82d   :  { %1939 = vmatmul.mubr.msk.bf16.vlgmr.msra.gmra.mxu0 %vm185_vm2, %v684_v35  ;;  %1958 = vmatprep.subr.bf16.mxu1 %v2224_v0 }
 0x82e   :  { %1951 = vmatpush3.bf16.msra.mxu0 %v2332_v29  ;;  %1954 = vmatprep.mubr.msk.bf16.mxu0 %vm2225_vm0, %v2224_v0 }
 0x82f   :  { %1947 = vmatmul.mubr.msk.bf16.vlgmr.msra.gmra.mxu1 %vm185_vm2, %v684_v35  ;;  %1952 = vmatprep.subr.bf16.mxu0 %v2224_v0 }
 0x830   :  { %1959 = vmatpush3.bf16.msra.mxu1 %v2337_v30  ;;  %1962 = vmatprep.mubr.msk.bf16.mxu1 %vm2225_vm0, %v2224_v0 }
 0x831   :  { %1960 = vmatprep.subr.bf16.mxu1 %v2224_v0 }
 0x832   :  { %1953 = vmatpush3.bf16.msra.mxu0 %v2344_v31 }
 0x833   :  { %1966 = vmatprep.subr.bf16.mxu0 %v2224_v0 }
 0x834   :  { %1961 = vmatpush3.bf16.msra.mxu1 %v2352_v32 }
 0x835   :  { %1974 = vmatprep.subr.bf16.mxu1 %v2224_v0 }
 0x8e7   :  { %v676_v36 = vpop.f32.mrf.mxu1 }
 0x8e9   :  { %v1932_v37 = vpop.f32.mrf.mxu1 }
 0x8eb   :  { %v679_v38 = vpop.f32.mrf.mxu1 }
 0x8ed   :  { %v1933_v39 = vpop.f32.mrf.mxu1  ;;  %v722_v40 = vpop.f32.mrf.mxu0 }
 0x8ee   :  { %v723_v43 = vadd.f32 %v722_v40, %v676_v36 }
 0x8ef   :  { %v1940_v48 = vpop.f32.mrf.mxu0  ;;  %v786_v50 = vpop.f32.mrf.mxu1 }
 0x8f0   :  { %v728_v51 = vadd.f32 %v2397_v49, %v723_v43  ;;  %v792_v52 = vadd.f32 %v786_v50, %v154_v41  ;;  %v159_v43 = vadd.f32 %v2315_v8, %v2387_v45 }
 0x8f1   :  { %v725_v53 = vpop.f32.mrf.mxu0  ;;  %v1948_v54 = vpop.f32.mrf.mxu1 }
 0x8f2   :  { %2128 = vtanh.f32 %v728_v51  ;;  %v729_v42 = vsub.f32 0.0, %v728_v51  ;;  %v793_v60 = vsub.f32 0.0, %v792_v52 }
 0x8f3   :  { %2130 = vtanh.f32 %v792_v52  ;;  %v1941_v55 = vpop.f32.mrf.mxu0  ;;  %v789_v56 = vpop.f32.mrf.mxu1 }
 0x8f4   :  { %v730_v61 = vmul.f32 1.442695, %v729_v42  ;;  %v794_v62 = vmul.f32 1.442695, %v793_v60 }
 0x8f5   :  { %v1949_v57 = vpop.f32.mrf.mxu1 }
 0x8f6   :  { %2132 = vpow2.f32 %v730_v61 }
 0x8f7   :  { %2134 = vpow2.f32 %v794_v62 }
 0x8ff   :  { %v2129_v58 = vpop.eup %2128 }
 0x900   :  { %v2131_v59 = vpop.eup %2130  ;;  %737 = vrot.lane.b32.xlu0 %v2129_v58, %s2227_s20 }
 0x901   :  { %801 = vrot.lane.b32.xlu1 %v2131_v59, %s2227_s20 }
 0x903   :  { %v2133_v63 = vpop.eup %2132 }
 0x904   :  { %v2135_v1 = vpop.eup %2134  ;;  %v732_v3 = vadd.f32 1.0, %v2133_v63 }
 0x905   :  { %v796_v4 = vadd.f32 1.0, %v2135_v1 }
 0x906   :  { %2136 = vrcp.f32 %v732_v3 }
 0x907   :  { %2138 = vrcp.f32 %v796_v4 }
 0x913   :  { %v2137_v7 = vpop.eup %2136 }
 0x914   :  { %v2139_v9 = vpop.eup %2138  ;;  %v735_v13 = vmul.f32 %v2137_v7, %v2444_v18 }
 0x915   :  { %v799_v14 = vmul.f32 %v2139_v9, %v2448_v22 }
 0x972   :  { %v738_v6 = vpop.permute.xlu0 %737 }
 0x973   :  { %v802_v10 = vpop.permute.xlu1 %801  ;;  %v740_v11 = vmul.f32 %v2137_v7, %v738_v6 }
 0x974   :  { %v804_v12 = vmul.f32 %v2139_v9, %v802_v10 }
 0x975   :  { %742 = vrot.lane.b32.xlu0 %v740_v11, %s2228_s21 }
 0x976   :  { %806 = vrot.lane.b32.xlu1 %v804_v12, %s2228_s21 }
 0x9e7   :  { %v743_v15 = vpop.permute.xlu0 %742 }
 0x9e8   :  { %v807_v16 = vpop.permute.xlu1 %806  ;;  %v2485_v17 = vadd.f32 %v743_v15, %v735_v13 }
 0x9e9   :  { %v2487_v19 = vadd.f32 %v807_v16, %v799_v14 }
 0x9ea   :  { %2140 = vtanh.f32 %v2485_v17 }
 0x9eb   :  { %2142 = vtanh.f32 %v2487_v19 }
 0x9f7   :  { %v2141_v21 = vpop.eup %2140 }
 0x9f8   :  { %v2143_v24 = vpop.eup %2142  ;;  %748 = vrot.lane.b32.xlu0 %v2141_v21, %s2227_s20 }
 0x9f9   :  { %812 = vrot.lane.b32.xlu1 %v2143_v24, %s2227_s20 }
 0xa6a   :  { %v749_v25 = vpop.permute.xlu0 %748 }
 0xa6b   :  { %v813_v18 = vpop.permute.xlu1 %812  ;;  %v751_v27 = vmul.f32 %v2137_v7, %v749_v25 }
 0xa6c   :  { %v815_v22 = vmul.f32 %v2139_v9, %v813_v18 }
 0xa6d   :  { %v817_v23 = vpack.c.bf16 %v751_v27, %v751_v27 }
 0xa6e   :  { %v816_v28 = vpack.c.bf16 %v815_v22, %v815_v22 }
 0xa6f   :  { %819 = vrot.lane.b32.xlu0 %v817_v23, %s2228_s21 }
 0xa70   :  { %865 = vrot.lane.b32.xlu1 %v816_v28, %s2228_s21 }
 0xae1   :  { %v820_v26 = vpop.permute.xlu0 %819 }
 0xae2   :  { %v866_v33 = vpop.permute.xlu1 %865  ;;  %1955 = vmatmul.mubr.msk.bf16.vlgmr.msra.gmra.mxu0 %vm185_vm2, %v820_v26 }
 0xae3   :  { %1963 = vmatmul.mubr.msk.bf16.vlgmr.msra.gmra.mxu1 %vm185_vm2, %v866_v33  ;;  %1967 = vmatpush3.bf16.msra.mxu0 %v2288_v2 }
 0xae4   :  { %1968 = vmatprep.subr.bf16.mxu0 %v2224_v0  ;;  %1970 = vmatprep.mubr.msk.bf16.mxu0 %vm2225_vm0, %v2224_v0 }
 0xae5   :  { %1975 = vmatpush3.bf16.msra.mxu1 %v2332_v29  ;;  %1978 = vmatprep.mubr.msk.bf16.mxu1 %vm2225_vm0, %v2224_v0 }
 0xae6   :  { %1976 = vmatprep.subr.bf16.mxu1 %v2224_v0 }
 0xae7   :  { %1969 = vmatpush3.bf16.msra.mxu0 %v2302_v5 }
 0xae8   :  { %1982 = vmatprep.subr.bf16.mxu0 %v2224_v0 }
 0xae9   :  { %1977 = vmatpush3.bf16.msra.mxu1 %v2344_v31 }
 0xaea   :  { %1971 = vmatmul.mubr.msk.bf16.vlgmr.msra.gmra.mxu0 %vm185_vm2, %v866_v33  ;;  %1990 = vmatprep.subr.bf16.mxu1 %v2224_v0 }
 0xaeb   :  { %1983 = vmatpush3.bf16.msra.mxu0 %v2337_v30  ;;  %1986 = vmatprep.mubr.msk.bf16.mxu0 %vm2225_vm0, %v2224_v0 }
 0xaec   :  { %1984 = vmatprep.subr.bf16.mxu0 %v2224_v0 }
 0xaef   :  { %1985 = vmatpush3.bf16.msra.mxu0 %v2352_v32 }
 0xaf0   :  { %1998 = vmatprep.subr.bf16.mxu0 %v2224_v0 }
 0xba2   :  { %v858_v34 = vpop.f32.mrf.mxu0 }
 0xba3   :  { %v904_v20 = vpop.f32.mrf.mxu1 }
 0xba4   :  { %v905_v35 = vadd.f32 %v904_v20, %v858_v34  ;;  %v1956_v36 = vpop.f32.mrf.mxu0 }
 0xba5   :  { %v1964_v37 = vpop.f32.mrf.mxu1 }
 0xba6   :  { %v910_v38 = vadd.f32 %v2397_v49, %v905_v35  ;;  %v861_v39 = vpop.f32.mrf.mxu0  ;;  %v162_v35 = vadd.f32 %v2315_v8, %v2391_v47 }
 0xba7   :  { %v907_v40 = vpop.f32.mrf.mxu1 }
 0xba8   :  { %2144 = vtanh.f32 %v910_v38  ;;  %v1957_v41 = vpop.f32.mrf.mxu0  ;;  %v911_v57 = vsub.f32 0.0, %v910_v38 }
 0xba9   :  { %v1965_v48 = vpop.f32.mrf.mxu1 }
 0xbaa   :  { %v968_v50 = vpop.f32.mrf.mxu0  ;;  %v912_v58 = vmul.f32 1.442695, %v911_v57 }
 0xbab   :  { %v974_v51 = vadd.f32 %v968_v50, %v159_v43 }
 0xbac   :  { %v1972_v52 = vpop.f32.mrf.mxu0 }
 0xbad   :  { %2146 = vtanh.f32 %v974_v51  ;;  %v975_v59 = vsub.f32 0.0, %v974_v51 }
 0xbae   :  { %v971_v53 = vpop.f32.mrf.mxu0  ;;  %2148 = vpow2.f32 %v912_v58 }
 0xbaf   :  { %v976_v42 = vmul.f32 1.442695, %v975_v59 }
 0xbb0   :  { %v1973_v54 = vpop.f32.mrf.mxu0 }
 0xbb1   :  { %2150 = vpow2.f32 %v976_v42 }
 0xbb5   :  { %v2145_v55 = vpop.eup %2144 }
 0xbb6   :  { %919 = vrot.lane.b32.xlu0 %v2145_v55, %s2227_s20 }
 0xbba   :  { %v2147_v56 = vpop.eup %2146 }
 0xbbb   :  { %983 = vrot.lane.b32.xlu1 %v2147_v56, %s2227_s20  ;;  %v2149_v45 = vpop.eup %2148 }
 0xbbc   :  { %v914_v60 = vadd.f32 1.0, %v2149_v45 }
 0xbbe   :  { %v2151_v61 = vpop.eup %2150  ;;  %2152 = vrcp.f32 %v914_v60 }
 0xbbf   :  { %v978_v62 = vadd.f32 1.0, %v2151_v61 }
 0xbc1   :  { %2154 = vrcp.f32 %v978_v62 }
 0xbcb   :  { %v2153_v63 = vpop.eup %2152 }
 0xbcc   :  { %v917_v9 = vmul.f32 %v2153_v63, %v2485_v17 }
 0xbce   :  { %v2155_v4 = vpop.eup %2154 }
 0xbcf   :  { %v981_v12 = vmul.f32 %v2155_v4, %v2487_v19 }
 0xc28   :  { %v920_v1 = vpop.permute.xlu0 %919 }
 0xc29   :  { %v922_v3 = vmul.f32 %v2153_v63, %v920_v1 }
 0xc2b   :  { %924 = vrot.lane.b32.xlu0 %v922_v3, %s2228_s21 }
 0xc2d   :  { %v984_v7 = vpop.permute.xlu1 %983 }
 0xc2e   :  { %v986_v6 = vmul.f32 %v2155_v4, %v984_v7 }
 0xc30   :  { %988 = vrot.lane.b32.xlu1 %v986_v6, %s2228_s21 }
 0xc9d   :  { %v925_v10 = vpop.permute.xlu0 %924 }
 0xc9e   :  { %v2524_v11 = vadd.f32 %v925_v10, %v917_v9 }
 0xca0   :  { %2156 = vtanh.f32 %v2524_v11 }
 0xca2   :  { %v989_v13 = vpop.permute.xlu1 %988 }
 0xca3   :  { %v2528_v14 = vadd.f32 %v989_v13, %v981_v12 }
 0xca5   :  { %2158 = vtanh.f32 %v2528_v14 }
 0xcad   :  { %v2157_v15 = vpop.eup %2156 }
 0xcae   :  { %930 = vrot.lane.b32.xlu0 %v2157_v15, %s2227_s20 }
 0xcb2   :  { %v2159_v16 = vpop.eup %2158 }
 0xcb3   :  { %994 = vrot.lane.b32.xlu1 %v2159_v16, %s2227_s20 }
 0xd20   :  { %v931_v21 = vpop.permute.xlu0 %930 }
 0xd21   :  { %v933_v17 = vmul.f32 %v2153_v63, %v931_v21 }
 0xd23   :  { %v999_v24 = vpack.c.bf16 %v933_v17, %v933_v17 }
 0xd25   :  { %1001 = vrot.lane.b32.xlu0 %v999_v24, %s2228_s21  ;;  %v995_v25 = vpop.permute.xlu1 %994 }
 0xd26   :  { %v997_v18 = vmul.f32 %v2155_v4, %v995_v25 }
 0xd28   :  { %v998_v27 = vpack.c.bf16 %v997_v18, %v997_v18 }
 0xd2a   :  { %1047 = vrot.lane.b32.xlu1 %v998_v27, %s2228_s21 }
 0xd97   :  { %v1002_v19 = vpop.permute.xlu0 %1001 }
 0xd98   :  { %1979 = vmatmul.mubr.msk.bf16.vlgmr.msra.gmra.mxu1 %vm185_vm2, %v1002_v19 }
 0xd99   :  { %1991 = vmatpush3.bf16.msra.mxu1 %v2288_v2  ;;  %1994 = vmatprep.mubr.msk.bf16.mxu1 %vm2225_vm0, %v2224_v0 }
 0xd9a   :  { %1992 = vmatprep.subr.bf16.mxu1 %v2224_v0 }
 0xd9c   :  { %v1048_v22 = vpop.permute.xlu1 %1047 }
 0xd9d   :  { %1993 = vmatpush3.bf16.msra.mxu1 %v2302_v5  ;;  %1987 = vmatmul.mubr.msk.bf16.vlgmr.msra.gmra.mxu0 %vm185_vm2, %v1048_v22 }
 0xd9e   :  { %2006 = vmatprep.subr.bf16.mxu1 %v2224_v0  ;;  %1999 = vmatpush3.bf16.msra.mxu0 %v2332_v29 }
 0xd9f   :  { %2000 = vmatprep.subr.bf16.mxu0 %v2224_v0  ;;  %2002 = vmatprep.mubr.msk.bf16.mxu0 %vm2225_vm0, %v2224_v0 }
 0xda0   :  { %1995 = vmatmul.mubr.msk.bf16.vlgmr.msra.gmra.mxu1 %vm185_vm2, %v1048_v22  ;;  %v167_v22 = vadd.f32 %v2385_v44, %v2315_v8 }
 0xda1   :  { %2007 = vmatpush3.bf16.msra.mxu1 %v2337_v30  ;;  %2010 = vmatprep.mubr.msk.bf16.mxu1 %vm2225_vm0, %v2224_v0 }
 0xda2   :  { %2008 = vmatprep.subr.bf16.mxu1 %v2224_v0  ;;  %2001 = vmatpush3.bf16.msra.mxu0 %v2344_v31 }
 0xda3   :  { %2014 = vmatprep.subr.bf16.mxu0 %v2224_v0 }
 0xda5   :  { %2009 = vmatpush3.bf16.msra.mxu1 %v2352_v32 }
 0xda6   :  { %2022 = vmatprep.subr.bf16.mxu1 %v2224_v0 }
 0xe58   :  { %v1040_v23 = vpop.f32.mrf.mxu1 }
 0xe5a   :  { %v1980_v28 = vpop.f32.mrf.mxu1 }
 0xe5c   :  { %v1043_v26 = vpop.f32.mrf.mxu1 }
 0xe5d   :  { %v1086_v33 = vpop.f32.mrf.mxu0 }
 0xe5e   :  { %v1981_v34 = vpop.f32.mrf.mxu1  ;;  %v1087_v20 = vadd.f32 %v1086_v33, %v1040_v23 }
 0xe5f   :  { %v1988_v36 = vpop.f32.mrf.mxu0 }
 0xe60   :  { %v1092_v37 = vadd.f32 %v2397_v49, %v1087_v20  ;;  %v1150_v38 = vpop.f32.mrf.mxu1 }
 0xe61   :  { %v1156_v39 = vadd.f32 %v1150_v38, %v162_v35  ;;  %v1089_v40 = vpop.f32.mrf.mxu0 }
 0xe62   :  { %2160 = vtanh.f32 %v1092_v37  ;;  %v1996_v41 = vpop.f32.mrf.mxu1  ;;  %v1093_v53 = vsub.f32 0.0, %v1092_v37 }
 0xe63   :  { %2162 = vtanh.f32 %v1156_v39  ;;  %v1989_v43 = vpop.f32.mrf.mxu0  ;;  %v1157_v47 = vsub.f32 0.0, %v1156_v39 }
 0xe64   :  { %v1153_v48 = vpop.f32.mrf.mxu1  ;;  %v1094_v54 = vmul.f32 1.442695, %v1093_v53 }
 0xe65   :  { %v1158_v55 = vmul.f32 1.442695, %v1157_v47 }
 0xe66   :  { %v1997_v50 = vpop.f32.mrf.mxu1  ;;  %2164 = vpow2.f32 %v1094_v54 }
 0xe67   :  { %2166 = vpow2.f32 %v1158_v55 }
 0xe6f   :  { %v2161_v51 = vpop.eup %2160 }
 0xe70   :  { %v2163_v52 = vpop.eup %2162  ;;  %1101 = vrot.lane.b32.xlu0 %v2161_v51, %s2227_s20 }
 0xe71   :  { %1165 = vrot.lane.b32.xlu1 %v2163_v52, %s2227_s20 }
 0xe73   :  { %v2165_v56 = vpop.eup %2164 }
 0xe74   :  { %v2167_v57 = vpop.eup %2166  ;;  %v1096_v58 = vadd.f32 1.0, %v2165_v56 }
 0xe75   :  { %v1160_v59 = vadd.f32 1.0, %v2167_v57 }
 0xe76   :  { %2168 = vrcp.f32 %v1096_v58 }
 0xe77   :  { %2170 = vrcp.f32 %v1160_v59 }
 0xe83   :  { %v2169_v42 = vpop.eup %2168 }
 0xe84   :  { %v2171_v60 = vpop.eup %2170  ;;  %v1099_v1 = vmul.f32 %v2169_v42, %v2524_v11 }
 0xe85   :  { %v1163_v3 = vmul.f32 %v2171_v60, %v2528_v14 }
 0xee2   :  { %v1102_v45 = vpop.permute.xlu0 %1101 }
 0xee3   :  { %v1166_v61 = vpop.permute.xlu1 %1165  ;;  %v1104_v62 = vmul.f32 %v2169_v42, %v1102_v45 }
 0xee4   :  { %v1168_v63 = vmul.f32 %v2171_v60, %v1166_v61 }
 0xee5   :  { %1106 = vrot.lane.b32.xlu0 %v1104_v62, %s2228_s21 }
 0xee6   :  { %1170 = vrot.lane.b32.xlu1 %v1168_v63, %s2228_s21 }
 0xf57   :  { %v1107_v4 = vpop.permute.xlu0 %1106 }
 0xf58   :  { %v1171_v7 = vpop.permute.xlu1 %1170  ;;  %v2565_v6 = vadd.f32 %v1107_v4, %v1099_v1  ;;  %v2216_v4 = vld [vmem:[%s2688_s3 + $0x8] sm:$0xff]  }
 0xf59   :  { %v2567_v9 = vadd.f32 %v1171_v7, %v1163_v3 }
 0xf5a   :  { %2172 = vtanh.f32 %v2565_v6 }
 0xf5b   :  { %2174 = vtanh.f32 %v2567_v9 }
 0xf67   :  { %v2173_v10 = vpop.eup %2172 }
 0xf68   :  { %v2175_v12 = vpop.eup %2174  ;;  %1112 = vrot.lane.b32.xlu0 %v2173_v10, %s2227_s20  ;;  %v2219_v10 = vld [vmem:[%s2692_s4 + $0x8] sm:$0xff]  }
 0xf69   :  { %1176 = vrot.lane.b32.xlu1 %v2175_v12, %s2227_s20  ;;  %v2220_v12 = vld [vmem:[%s2691_s5] sm:$0xff]  }
 0xfda   :  { %v1113_v13 = vpop.permute.xlu0 %1112 }
 0xfdb   :  { %v1177_v11 = vpop.permute.xlu1 %1176  ;;  %v1115_v15 = vmul.f32 %v2169_v42, %v1113_v13  ;;  %v2221_v13 = vld [vmem:[%s2692_s4] sm:$0xff]  }
 0xfdc   :  { %v1179_v14 = vmul.f32 %v2171_v60, %v1177_v11 }
 0xfdd   :  { %v1181_v16 = vpack.c.bf16 %v1115_v15, %v1115_v15 }
 0xfde   :  { %v1180_v21 = vpack.c.bf16 %v1179_v14, %v1179_v14 }
 0xfdf   :  { %1183 = vrot.lane.b32.xlu0 %v1181_v16, %s2228_s21 }
 0xfe0   :  { %1229 = vrot.lane.b32.xlu1 %v1180_v21, %s2228_s21 }
0x1051   :  { %v1184_v17 = vpop.permute.xlu0 %1183 }
0x1052   :  { %v1230_v24 = vpop.permute.xlu1 %1229  ;;  %2003 = vmatmul.mubr.msk.bf16.vlgmr.msra.gmra.mxu0 %vm185_vm2, %v1184_v17 }
0x1053   :  { %2011 = vmatmul.mubr.msk.bf16.vlgmr.msra.gmra.mxu1 %vm185_vm2, %v1230_v24  ;;  %2015 = vmatpush3.bf16.msra.mxu0 %v2288_v2 }
0x1054   :  { %2016 = vmatprep.subr.bf16.mxu0 %v2224_v0  ;;  %2018 = vmatprep.mubr.msk.bf16.mxu0 %vm2225_vm0, %v2224_v0 }
0x1055   :  { %2023 = vmatpush3.bf16.msra.mxu1 %v2332_v29  ;;  %2026 = vmatprep.mubr.msk.bf16.mxu1 %vm2225_vm0, %v2224_v0 }
0x1056   :  { %2024 = vmatprep.subr.bf16.mxu1 %v2224_v0 }
0x1057   :  { %2017 = vmatpush3.bf16.msra.mxu0 %v2302_v5 }
0x1058   :  { %2030 = vmatprep.subr.bf16.mxu0 %v2224_v0 }
0x1059   :  { %2025 = vmatpush3.bf16.msra.mxu1 %v2344_v31 }
0x105a   :  { %2019 = vmatmul.mubr.msk.bf16.vlgmr.msra.gmra.mxu0 %vm185_vm2, %v1230_v24  ;;  %2038 = vmatprep.subr.bf16.mxu1 %v2224_v0  ;;  %v2222_v24 = vld [vmem:[%s2690_s2] ss:$0 sm:$0xff] }
0x105b   :  { %2031 = vmatpush3.bf16.msra.mxu0 %v2337_v30  ;;  %2034 = vmatprep.mubr.msk.bf16.mxu0 %vm2225_vm0, %v2224_v0 }
0x105c   :  { %2032 = vmatprep.subr.bf16.mxu0 %v2224_v0 }
0x105f   :  { %2033 = vmatpush3.bf16.msra.mxu0 %v2352_v32 }
0x1060   :  { %2046 = vmatprep.subr.bf16.mxu0 %v2224_v0 }
0x1112   :  { %v1222_v2 = vpop.f32.mrf.mxu0 }
0x1113   :  { %v1268_v5 = vpop.f32.mrf.mxu1 }
0x1114   :  { %v1269_v29 = vadd.f32 %v1268_v5, %v1222_v2  ;;  %v2004_v25 = vpop.f32.mrf.mxu0  ;;  %v170_v2 = vadd.f32 %v2222_v24, %v2389_v46 }
0x1115   :  { %v2012_v31 = vpop.f32.mrf.mxu1 }
0x1116   :  { %v1274_v18 = vadd.f32 %v2397_v49, %v1269_v29  ;;  %v1225_v27 = vpop.f32.mrf.mxu0 }
0x1117   :  { %v1271_v19 = vpop.f32.mrf.mxu1 }
0x1118   :  { %2176 = vtanh.f32 %v1274_v18  ;;  %v2005_v30 = vpop.f32.mrf.mxu0  ;;  %v1275_v36 = vsub.f32 0.0, %v1274_v18 }
0x1119   :  { %v2013_v23 = vpop.f32.mrf.mxu1 }
0x111a   :  { %v1332_v28 = vpop.f32.mrf.mxu0  ;;  %v1276_v37 = vmul.f32 1.442695, %v1275_v36 }
0x111b   :  { %v1338_v26 = vadd.f32 %v1332_v28, %v167_v22 }
0x111c   :  { %v2020_v32 = vpop.f32.mrf.mxu0 }
0x111d   :  { %2178 = vtanh.f32 %v1338_v26  ;;  %v1339_v38 = vsub.f32 0.0, %v1338_v26 }
0x111e   :  { %v1335_v33 = vpop.f32.mrf.mxu0  ;;  %2180 = vpow2.f32 %v1276_v37 }
0x111f   :  { %v1340_v39 = vmul.f32 1.442695, %v1339_v38 }
0x1120   :  { %v2021_v34 = vpop.f32.mrf.mxu0 }
0x1121   :  { %2182 = vpow2.f32 %v1340_v39 }
0x1125   :  { %v2177_v20 = vpop.eup %2176 }
0x1126   :  { %1283 = vrot.lane.b32.xlu0 %v2177_v20, %s2227_s20 }
0x112a   :  { %v2179_v35 = vpop.eup %2178 }
0x112b   :  { %1347 = vrot.lane.b32.xlu1 %v2179_v35, %s2227_s20  ;;  %v2181_v8 = vpop.eup %2180 }
0x112c   :  { %v1278_v44 = vadd.f32 1.0, %v2181_v8 }
0x112e   :  { %v2183_v40 = vpop.eup %2182  ;;  %2184 = vrcp.f32 %v1278_v44 }
0x112f   :  { %v1342_v41 = vadd.f32 1.0, %v2183_v40 }
0x1131   :  { %2186 = vrcp.f32 %v1342_v41 }
0x113b   :  { %v2185_v43 = vpop.eup %2184 }
0x113c   :  { %v1281_v47 = vmul.f32 %v2185_v43, %v2565_v6  ;;  %v2217_v6 = vld [vmem:[%s2688_s3] sm:$0xff]  }
0x113e   :  { %v2187_v51 = vpop.eup %2186 }
0x113f   :  { %v1345_v56 = vmul.f32 %v2187_v51, %v2567_v9  ;;  %v2218_v9 = vld [vmem:[%s2691_s5 + $0x8] sm:$0xff]  }
0x1198   :  { %v1284_v48 = vpop.permute.xlu0 %1283 }
0x1199   :  { %v1286_v50 = vmul.f32 %v2185_v43, %v1284_v48 }
0x119b   :  { %1288 = vrot.lane.b32.xlu0 %v1286_v50, %s2228_s21 }
0x119d   :  { %v1348_v52 = vpop.permute.xlu1 %1347 }
0x119e   :  { %v1350_v53 = vmul.f32 %v2187_v51, %v1348_v52 }
0x11a0   :  { %1352 = vrot.lane.b32.xlu1 %v1350_v53, %s2228_s21 }
0x120d   :  { %v1289_v54 = vpop.permute.xlu0 %1288 }
0x120e   :  { %v2604_v55 = vadd.f32 %v1289_v54, %v1281_v47 }
0x1210   :  { %2188 = vtanh.f32 %v2604_v55 }
0x1212   :  { %v1353_v57 = vpop.permute.xlu1 %1352 }
0x1213   :  { %v2608_v58 = vadd.f32 %v1353_v57, %v1345_v56 }
0x1215   :  { %2190 = vtanh.f32 %v2608_v58 }
0x121d   :  { %v2189_v59 = vpop.eup %2188 }
0x121e   :  { %1294 = vrot.lane.b32.xlu0 %v2189_v59, %s2227_s20 }
0x1222   :  { %v2191_v42 = vpop.eup %2190 }
0x1223   :  { %1358 = vrot.lane.b32.xlu1 %v2191_v42, %s2227_s20 }
0x1290   :  { %v1295_v45 = vpop.permute.xlu0 %1294 }
0x1291   :  { %v1297_v60 = vmul.f32 %v2185_v43, %v1295_v45 }
0x1293   :  { %v1363_v61 = vpack.c.bf16 %v1297_v60, %v1297_v60 }
0x1295   :  { %1365 = vrot.lane.b32.xlu0 %v1363_v61, %s2228_s21  ;;  %v1359_v62 = vpop.permute.xlu1 %1358 }
0x1296   :  { %v1361_v63 = vmul.f32 %v2187_v51, %v1359_v62 }
0x1298   :  { %v1362_v1 = vpack.c.bf16 %v1361_v63, %v1361_v63 }
0x129a   :  { %1411 = vrot.lane.b32.xlu1 %v1362_v1, %s2228_s21  ;;  %v2223_v1 = vld [vmem:[%s2693_s6] ss:$0 sm:$0xff] }
0x1307   :  { %v1366_v3 = vpop.permute.xlu0 %1365 }
0x1308   :  { %2027 = vmatmul.mubr.msk.bf16.vlgmr.msra.gmra.mxu1 %vm185_vm2, %v1366_v3 }
0x1309   :  { %2039 = vmatpush3.bf16.msra.mxu1 %v2216_v4  ;;  %2042 = vmatprep.mubr.msk.bf16.mxu1 %vm2225_vm0, %v2224_v0 }
0x130a   :  { %2040 = vmatprep.subr.bf16.mxu1 %v2224_v0 }
0x130c   :  { %v1412_v7 = vpop.permute.xlu1 %1411 }
0x130d   :  { %2041 = vmatpush3.bf16.msra.mxu1 %v2217_v6  ;;  %2035 = vmatmul.mubr.msk.bf16.vlgmr.msra.gmra.mxu0 %vm185_vm2, %v1412_v7 }
0x130e   :  { %2054 = vmatprep.subr.bf16.mxu1 %v2224_v0  ;;  %2047 = vmatpush3.bf16.msra.mxu0 %v2218_v9 }
0x130f   :  { %2048 = vmatprep.subr.bf16.mxu0 %v2224_v0  ;;  %2050 = vmatprep.mubr.msk.bf16.mxu0 %vm2225_vm0, %v2224_v0 }
0x1310   :  { %2043 = vmatmul.mubr.msk.bf16.vlgmr.msra.gmra.mxu1 %vm185_vm2, %v1412_v7 }
0x1311   :  { %2055 = vmatpush3.bf16.msra.mxu1 %v2219_v10  ;;  %2058 = vmatprep.mubr.msk.bf16.mxu1 %vm2225_vm0, %v2224_v0 }
0x1312   :  { %2056 = vmatprep.subr.bf16.mxu1 %v2224_v0  ;;  %2049 = vmatpush3.bf16.msra.mxu0 %v2220_v12 }
0x1313   :  { %2062 = vmatprep.subr.bf16.mxu0 %v2224_v0 }
0x1315   :  { %2057 = vmatpush3.bf16.msra.mxu1 %v2221_v13 }
0x13c8   :  { %v1404_v11 = vpop.f32.mrf.mxu1 }
0x13ca   :  { %v2028_v15 = vpop.f32.mrf.mxu1 }
0x13cc   :  { %v1407_v14 = vpop.f32.mrf.mxu1 }
0x13cd   :  { %v1450_v16 = vpop.f32.mrf.mxu0 }
0x13ce   :  { %v2029_v21 = vpop.f32.mrf.mxu1  ;;  %v1451_v17 = vadd.f32 %v1450_v16, %v1404_v11 }
0x13cf   :  { %v2036_v5 = vpop.f32.mrf.mxu0 }
0x13d0   :  { %v1456_v29 = vadd.f32 %v2397_v49, %v1451_v17  ;;  %v1514_v25 = vpop.f32.mrf.mxu1  ;;  %v2086_v5 = vld [vmem:[%s2694_s7 + $0x8] sm:$0xff]  }
0x13d1   :  { %v1520_v31 = vadd.f32 %v1514_v25, %v170_v2  ;;  %v1453_v18 = vpop.f32.mrf.mxu0 }
0x13d2   :  { %2192 = vtanh.f32 %v1456_v29  ;;  %v2044_v27 = vpop.f32.mrf.mxu1  ;;  %v1457_v26 = vsub.f32 0.0, %v1456_v29  ;;  %v2087_v29 = vld [vmem:[%s2694_s7] sm:$0xff]  }
0x13d3   :  { %2194 = vtanh.f32 %v1520_v31  ;;  %v2037_v19 = vpop.f32.mrf.mxu0  ;;  %v1521_v46 = vsub.f32 0.0, %v1520_v31 }
0x13d4   :  { %v1517_v30 = vpop.f32.mrf.mxu1  ;;  %v1458_v32 = vmul.f32 1.442695, %v1457_v26 }
0x13d5   :  { %v1522_v33 = vmul.f32 1.442695, %v1521_v46  ;;  %v1776_v30 = vld [vmem:[%s2695_s8] ss:$0 sm:$0xff] }
0x13d6   :  { %v2045_v22 = vpop.f32.mrf.mxu1  ;;  %2196 = vpow2.f32 %v1458_v32 }
0x13d7   :  { %2198 = vpow2.f32 %v1522_v33 }
0x13df   :  { %v2193_v23 = vpop.eup %2192 }
0x13e0   :  { %v2195_v28 = vpop.eup %2194  ;;  %1465 = vrot.lane.b32.xlu0 %v2193_v23, %s2227_s20 }
0x13e1   :  { %1529 = vrot.lane.b32.xlu1 %v2195_v28, %s2227_s20 }
0x13e3   :  { %v2197_v49 = vpop.eup %2196 }
0x13e4   :  { %v2199_v34 = vpop.eup %2198  ;;  %v1460_v20 = vadd.f32 1.0, %v2197_v49 }
0x13e5   :  { %v1524_v35 = vadd.f32 1.0, %v2199_v34 }
0x13e6   :  { %2200 = vrcp.f32 %v1460_v20 }
0x13e7   :  { %2202 = vrcp.f32 %v1524_v35 }
0x13f3   :  { %v2201_v36 = vpop.eup %2200 }
0x13f4   :  { %v2203_v38 = vpop.eup %2202  ;;  %v1463_v40 = vmul.f32 %v2201_v36, %v2604_v55 }
0x13f5   :  { %v1527_v41 = vmul.f32 %v2203_v38, %v2608_v58 }
0x1452   :  { %v1466_v37 = vpop.permute.xlu0 %1465 }
0x1453   :  { %v1530_v39 = vpop.permute.xlu1 %1529  ;;  %v1468_v8 = vmul.f32 %v2201_v36, %v1466_v37 }
0x1454   :  { %v1532_v44 = vmul.f32 %v2203_v38, %v1530_v39 }
0x1455   :  { %1470 = vrot.lane.b32.xlu0 %v1468_v8, %s2228_s21 }
0x1456   :  { %1534 = vrot.lane.b32.xlu1 %v1532_v44, %s2228_s21 }
0x14c7   :  { %v1471_v43 = vpop.permute.xlu0 %1470 }
0x14c8   :  { %v1535_v48 = vpop.permute.xlu1 %1534  ;;  %v1473_v50 = vadd.f32 %v1471_v43, %v1463_v40 }
0x14c9   :  { %v1537_v51 = vadd.f32 %v1535_v48, %v1527_v41 }
0x14ca   :  { %2204 = vtanh.f32 %v1473_v50 }
0x14cb   :  { %2206 = vtanh.f32 %v1537_v51 }
0x14d7   :  { %v2205_v52 = vpop.eup %2204 }
0x14d8   :  { %v2207_v53 = vpop.eup %2206  ;;  %1476 = vrot.lane.b32.xlu0 %v2205_v52, %s2227_s20 }
0x14d9   :  { %1540 = vrot.lane.b32.xlu1 %v2207_v53, %s2227_s20 }
0x154a   :  { %v1477_v47 = vpop.permute.xlu0 %1476 }
0x154b   :  { %v1541_v54 = vpop.permute.xlu1 %1540  ;;  %v1479_v56 = vmul.f32 %v2201_v36, %v1477_v47 }
0x154c   :  { %v1543_v57 = vmul.f32 %v2203_v38, %v1541_v54 }
0x154d   :  { %v1545_v59 = vpack.c.bf16 %v1479_v56, %v1479_v56 }
0x154e   :  { %v1544_v55 = vpack.c.bf16 %v1543_v57, %v1543_v57 }
0x154f   :  { %1547 = vrot.lane.b32.xlu0 %v1545_v59, %s2228_s21 }
0x1550   :  { %1593 = vrot.lane.b32.xlu1 %v1544_v55, %s2228_s21 }
0x15c1   :  { %v1548_v58 = vpop.permute.xlu0 %1547 }
0x15c2   :  { %v1594_v42 = vpop.permute.xlu1 %1593  ;;  %2051 = vmatmul.mubr.msk.bf16.vlgmr.msra.gmra.mxu0 %vm185_vm2, %v1548_v58 }
0x15c3   :  { %2059 = vmatmul.mubr.msk.bf16.vlgmr.msra.gmra.mxu1 %vm185_vm2, %v1594_v42  ;;  %2066 = vmatprep.mubr.msk.bf16.mxu0 %vm2225_vm0, %v2224_v0 }
0x15c4   :  { %2063 = vmatpush3.bf16.msra.mxu0 %v2086_v5 }
0x15c5   :  { %2064 = vmatprep.subr.bf16.mxu0 %v2224_v0 }
0x15c8   :  { %2065 = vmatpush3.bf16.msra.mxu0 %v2087_v29 }
0x1682   :  { %v1586_v45 = vpop.f32.mrf.mxu0 }
0x1683   :  { %v1632_v60 = vpop.f32.mrf.mxu1 }
0x1684   :  { %v1633_v61 = vadd.f32 %v1632_v60, %v1586_v45  ;;  %v2052_v62 = vpop.f32.mrf.mxu0 }
0x1685   :  { %v2060_v63 = vpop.f32.mrf.mxu1 }
0x1686   :  { %v1638_v3 = vadd.f32 %v2223_v1, %v1633_v61  ;;  %v1589_v4 = vpop.f32.mrf.mxu0 }
0x1687   :  { %v1635_v7 = vpop.f32.mrf.mxu1 }
0x1688   :  { %2208 = vtanh.f32 %v1638_v3  ;;  %v2053_v6 = vpop.f32.mrf.mxu0  ;;  %v1639_v12 = vsub.f32 0.0, %v1638_v3 }
0x1689   :  { %v2061_v9 = vpop.f32.mrf.mxu1 }
0x168a   :  { %v1640_v13 = vmul.f32 1.442695, %v1639_v12 }
0x168c   :  { %2210 = vpow2.f32 %v1640_v13 }
0x1695   :  { %v2209_v10 = vpop.eup %2208 }
0x1696   :  { %1647 = vrot.lane.b32.xlu0 %v2209_v10, %s2227_s20 }
0x1699   :  { %v2211_v11 = vpop.eup %2210 }
0x169a   :  { %v1642_v15 = vadd.f32 1.0, %v2211_v11 }
0x169c   :  { %2212 = vrcp.f32 %v1642_v15 }
0x16a9   :  { %v2213_v14 = vpop.eup %2212 }
0x16aa   :  { %v1645_v17 = vmul.f32 %v2213_v14, %v1473_v50 }
0x1708   :  { %v1648_v16 = vpop.permute.xlu0 %1647 }
0x1709   :  { %v1650_v21 = vmul.f32 %v2213_v14, %v1648_v16 }
0x170b   :  { %1652 = vrot.lane.b32.xlu1 %v1650_v21, %s2228_s21 }
0x177d   :  { %v1653_v24 = vpop.permute.xlu1 %1652 }
0x177e   :  { %v1655_v2 = vadd.f32 %v1653_v24, %v1645_v17 }
0x1780   :  { %2214 = vtanh.f32 %v1655_v2 }
0x178d   :  { %v2215_v25 = vpop.eup %2214 }
0x178e   :  { %1658 = vrot.lane.b32.xlu0 %v2215_v25, %s2227_s20 }
0x1800   :  { %v1659_v31 = vpop.permute.xlu0 %1658 }
0x1801   :  { %v1661_v18 = vmul.f32 %v2213_v14, %v1659_v31 }
0x1803   :  { %v1662_v27 = vpack.c.bf16 %v1661_v18, %v1661_v18 }
0x1805   :  { %1675 = vrot.lane.b32.xlu1 %v1662_v27, %s2228_s21 }
0x1877   :  { %v1676_v19 = vpop.permute.xlu1 %1675 }
0x1878   :  { %2067 = vmatmul.mubr.msk.bf16.vlgmr.msra.gmra.mxu0 %vm185_vm2, %v1676_v19 }
0x1938   :  { %v1726_v22 = vpop.f32.mrf.mxu0 }
0x1939   :  { %v1727_v23 = vadd.f32 %v1776_v30, %v1726_v22 }
0x193a   :  { %v2068_v28 = vpop.f32.mrf.mxu0 }
0x193b   :  { %1732 = vst [vmem:[%s2696_s9] sm:$0xff] %v1727_v23 }
0x193c   :  { %v1729_v0 = vpop.f32.mrf.mxu0 }
0x193e   :  { %v2069_v26 = vpop.f32.mrf.mxu0 }

</bundles_post_ra>
